<compile_context>
chip_gen: v7x
topology: tpu7x:2x2x1
jax: 0.10.0
libtpu: 0.0.40
codegen_flags: <defaults>
</compile_context>

<pallas_src>
import numpy as np
import jax
import jax.numpy as jnp
from jax.experimental import pallas as pl
from jax.experimental.pallas import tpu as pltpu


def _choose_tile_n(total_n: int, c: int, target_bytes: int = 8 << 20) -> int:
    """Largest 128-multiple divisor of total_n whose (c, tile_n) f32 block fits
    target_bytes, keeping >= 2 grid steps (even step count preferred)."""
    if total_n % 128 != 0:
        return total_n                       # full-extent block is always legal
    max_cols = max(128, (target_bytes // (c * 4)) // 128 * 128)
    cands = [t for t in range(128, total_n, 128)
             if total_n % t == 0 and t <= max_cols]
    if not cands:
        return total_n
    even = [t for t in cands if (total_n // t) % 2 == 0]
    return max(even) if even else max(cands)


def position_embedding_random(gaussian_matrix: jax.Array, size: int,
                              tile_n: int | None = None) -> jax.Array:
    """Pallas implementation of PositionEmbeddingRandom.forward(size)."""
    h = w = int(size)
    npf = int(gaussian_matrix.shape[1])
    c = 2 * npf
    total_n = h * w

    if tile_n is None:
        tile_n = _choose_tile_n(total_n, c)
    assert tile_n == total_n or (total_n % tile_n == 0 and tile_n % 128 == 0), \
        (total_n, tile_n)

    # Per-channel coefficients:  proj[k](i, j) = j*Ax[k] + i*Ay[k] + B[k]
    #   x_m = 2*(j+0.5)/w - 1,  y_m = 2*(i+0.5)/h - 1
    #   proj = 2*pi*(x_m*G[0,k] + y_m*G[1,k])
    g = gaussian_matrix.astype(jnp.float32)                       # (2, npf)
    ax = (4.0 * np.pi / w) * g[0]                                  # (npf,)
    ay = (4.0 * np.pi / h) * g[1]                                  # (npf,)
    b = (2.0 * np.pi) * ((1.0 / w - 1.0) * g[0] + (1.0 / h - 1.0) * g[1])
    coefs = jnp.stack([ax, ay, b], axis=1)                         # (npf, 3)

    w_pow2 = (w & (w - 1)) == 0
    log2w = int(w).bit_length() - 1

    def kernel(coef_ref, out_ref):
        ax_v = coef_ref[:, 0:1]                                    # (npf, 1) lane splat
        ay_v = coef_ref[:, 1:2]
        b_v = coef_ref[:, 2:3]
        n0 = pl.program_id(0) * tile_n
        n = jax.lax.broadcasted_iota(jnp.int32, (1, tile_n), 1) + n0
        if w_pow2:
            rowf = (n >> log2w).astype(jnp.float32)
            colf = (n & (w - 1)).astype(jnp.float32)
        else:
            # TODO(synk): float floor fallback is exact only for size < 2048.
            nf = n.astype(jnp.float32)
            rowf = jnp.floor((nf + 0.5) * jnp.float32(1.0 / w))
            colf = nf - rowf * jnp.float32(w)
        proj = colf * ax_v + rowf * ay_v + b_v                     # (npf, tile_n)
        out_ref[:npf, :] = jnp.sin(proj)
        out_ref[npf:, :] = jnp.cos(proj)

    block_bytes = c * tile_n * 4
    out2d = pl.pallas_call(
        kernel,
        out_shape=jax.ShapeDtypeStruct((c, total_n), jnp.float32),
        grid=(total_n // tile_n,),
        in_specs=[pl.BlockSpec((npf, 3), lambda i: (0, 0))],
        out_specs=pl.BlockSpec((c, tile_n), lambda i: (0, i)),
        compiler_params=pltpu.CompilerParams(
            dimension_semantics=("parallel",),
            vmem_limit_bytes=min(48 << 20,
                                 max(24 << 20, 4 * block_bytes + (8 << 20)))),
    )(coefs)
    return out2d.reshape(c, h, w)                                  # contiguous -> free


def _reference(gaussian_matrix: jax.Array, size: int) -> jax.Array:
    """Pure-JAX reference mirroring the PyTorch module (f32 throughout)."""
    h = w = size
    grid = jnp.ones((h, w), jnp.float32)
    y = (jnp.cumsum(grid, axis=0) - 0.5) / h
    x = (jnp.cumsum(grid, axis=1) - 0.5) / w
    xm = 2.0 * x - 1.0
    ym = 2.0 * y - 1.0
    proj = xm[..., None] * gaussian_matrix[0] + ym[..., None] * gaussian_matrix[1]
    proj = 2.0 * np.pi * proj
    pe = jnp.concatenate([jnp.sin(proj), jnp.cos(proj)], axis=-1)  # (h, w, 2*npf)
    return jnp.transpose(pe, (2, 0, 1))                            # (2*npf, h, w)


if __name__ == "__main__":
    num_pos_feats = 64   # SAM default -> C = 128 channels
    size = 16            # small grid; tile auto-selects 128 lanes -> 2 grid steps

    key = jax.random.PRNGKey(0)
    # scale=None in the module -> scale = 1.0
    gaussian_matrix = jax.random.normal(key, (2, num_pos_feats), dtype=jnp.float32)

    pe = position_embedding_random(gaussian_matrix, size)
    pe = jax.block_until_ready(pe)

    ref = _reference(gaussian_matrix, size)
    assert pe.shape == (2 * num_pos_feats, size, size), pe.shape
    assert pe.dtype == jnp.float32
    # Coefficient folding changes f32 rounding order slightly vs. the reference.
    np.testing.assert_allclose(np.asarray(pe), np.asarray(ref), rtol=1e-5, atol=5e-5)

    print("KERNEL_OK")
</pallas_src>

<mosaic_0001>
module attributes {stable_mosaic.version = 11 : i64} {
  func.func @kernel(%arg0: i32, %arg1: memref<64x3xf32, #tpu.memory_space<vmem>>, %arg2: memref<128x128xf32, #tpu.memory_space<vmem>>) attributes {dimension_semantics = [#tpu.dimension_semantics<parallel>], iteration_bounds = array<i64: 2>, scalar_prefetch = 0 : i64, scratch_operands = 0 : i64, tpu.core_type = #tpu.core_type<tc>, window_params = [{pipeline_mode = #tpu.pipeline_mode<synchronous>, transform_indices = @transform_0, window_bounds = array<i64: 64, 3>}, {transform_indices = @transform_1, window_bounds = array<i64: 128, 128>}]} {
    %c0 = arith.constant 0 : index
    %c0_0 = arith.constant 0 : index
    %0 = vector.load %arg1[%c0, %c0_0] : memref<64x3xf32, #tpu.memory_space<vmem>>, vector<64x1xf32>
    %c0_1 = arith.constant 0 : index
    %c1 = arith.constant 1 : index
    %1 = vector.load %arg1[%c0_1, %c1] : memref<64x3xf32, #tpu.memory_space<vmem>>, vector<64x1xf32>
    %c0_2 = arith.constant 0 : index
    %c2 = arith.constant 2 : index
    %2 = vector.load %arg1[%c0_2, %c2] : memref<64x3xf32, #tpu.memory_space<vmem>>, vector<64x1xf32>
    %c128_i32 = arith.constant 128 : i32
    %3 = arith.muli %arg0, %c128_i32 : i32
    %4 = tpu.iota {dimensions = array<i32: 1>} : vector<1x128xi32>
    %5 = vector.broadcast %3 : i32 to vector<1x128xi32>
    %6 = arith.addi %4, %5 : vector<1x128xi32>
    %c4_i32 = arith.constant 4 : i32
    %7 = vector.broadcast %c4_i32 : i32 to vector<1x128xi32>
    %8 = arith.shrsi %6, %7 : vector<1x128xi32>
    %9 = arith.sitofp %8 : vector<1x128xi32> to vector<1x128xf32>
    %c15_i32 = arith.constant 15 : i32
    %10 = vector.broadcast %c15_i32 : i32 to vector<1x128xi32>
    %11 = arith.andi %6, %10 : vector<1x128xi32>
    %12 = arith.sitofp %11 : vector<1x128xi32> to vector<1x128xf32>
    %13 = vector.broadcast %12 : vector<1x128xf32> to vector<64x128xf32>
    %14 = vector.broadcast %0 : vector<64x1xf32> to vector<64x128xf32>
    %15 = arith.mulf %13, %14 : vector<64x128xf32>
    %16 = vector.broadcast %9 : vector<1x128xf32> to vector<64x128xf32>
    %17 = vector.broadcast %1 : vector<64x1xf32> to vector<64x128xf32>
    %18 = arith.mulf %16, %17 : vector<64x128xf32>
    %19 = arith.addf %15, %18 : vector<64x128xf32>
    %20 = vector.broadcast %2 : vector<64x1xf32> to vector<64x128xf32>
    %21 = arith.addf %19, %20 : vector<64x128xf32>
    %22 = math.sin %21 : vector<64x128xf32>
    %c0_3 = arith.constant 0 : index
    %c0_4 = arith.constant 0 : index
    %23 = vector.load %arg2[%c0_3, %c0_4] : memref<128x128xf32, #tpu.memory_space<vmem>>, vector<64x128xf32>
    tpu.vector_store %arg2[%c0_3, %c0_4], %22 {strides = array<i32>} : memref<128x128xf32, #tpu.memory_space<vmem>>, vector<64x128xf32>,
    %24 = math.cos %21 : vector<64x128xf32>
    %c64 = arith.constant 64 : index
    %c0_5 = arith.constant 0 : index
    %25 = vector.load %arg2[%c64, %c0_5] : memref<128x128xf32, #tpu.memory_space<vmem>>, vector<64x128xf32>
    tpu.vector_store %arg2[%c64, %c0_5], %24 {strides = array<i32>} : memref<128x128xf32, #tpu.memory_space<vmem>>, vector<64x128xf32>,
    return
  }
  func.func @transform_0(%arg0: i32) -> (i32, i32) {
    %c0_i32 = arith.constant 0 : i32
    %c0_i32_0 = arith.constant 0 : i32
    %c0_i32_1 = arith.constant 0 : i32
    return %c0_i32, %c0_i32_0 : i32, i32
  }
  func.func @transform_1(%arg0: i32) -> (i32, i32) {
    %c0_i32 = arith.constant 0 : i32
    %c0_i32_0 = arith.constant 0 : i32
    return %c0_i32, %arg0 : i32, i32
  }
}

</mosaic_0001>

<bundles_post_ra>
// kernel: tpu_custom_call.1
= control target key start
LH: loop header
LB: loop body
LE: loop exit
PB: predicated region body
PF: predicated region fallthrough
CT: control target
= control target key end

     0   :  { %6 = vsyncpa [#allocation3], 0  ;;  %s3184_s0 = inlined_call_operand.vmem [shape: f32[64,3], index: 0, kind: input, shape index: {}]   ;;  %s3185_s1 = inlined_call_operand.hbm [shape: f32[128,256], index: 1, kind: output, shape index: {}]  }
   0x1   :  { %8 = vsyncpa [#allocation3 + $0x1], 0  ;;  %s2264_s6 = smov 0   ;;  %s2266_s7 = smov 0  }
   0x2   :  { %s2268_s8 = smov 0   ;;  %s2270_s9 = smov 0  }
   0x3 LB: > { %s1982_s10 = sadd.s32 4294967295, %s2239_s9   ;;  %s1983_s11 = sadd.s32 4294967294, %s2239_s9   ;;  %s2239_s9 = sphi %s2270_s9, %s3203_s9   ;;  %s2235_s8 = sphi %s2268_s8, %s3202_s8   ;;  %s2231_s7 = sphi %s2266_s7, %s3201_s7   ;;  %s2227_s6 = sphi %s2264_s6, %s3200_s6  }
   0x4   : > { %s2287_s12 = sadd.s32 1, %s2239_s9   ;;  %s42_s13 = sadd.s32 1, %s2235_s8 }
   0x5   : > { %s39_s14 = ssub.s32 %s2239_s9, %s2287_s12  ;;  %p52_p0 = scmp.ne.s32.totalorder %s2235_s8, %s2231_s7 }
   0x6   : > { %p40_p1 = scmp.eq.s32.totalorder %s39_s14, 0  ;;  %p53_p2 = scmp.eq.s32.totalorder %s1982_s10, 1 }
   0x7   : > { %p58_p3 = scmp.ne.s32.totalorder %s2231_s7, %s2227_s6  ;;  %p59_p4 = scmp.eq.s32.totalorder %s1983_s11, 1 }
   0x8   : > { %s2299_s15 = scalar_select %p40_p1, %s2235_s8, %s42_s13  }
   0x9   : > { %p2301_p5 = por %p53_p2, %p52_p0  ;;  %p2305_p6 = por %p59_p4, %p58_p3 }
   0xa   : > { %p1985_p7 = scmp.ge.s32.totalorder %s2239_s9, 1  ;;  %p80_p8 = scmp.lt.s32.totalorder %s2239_s9, 3 }
   0xc   : > { %p81_p9 = pnand %p1985_p7, %p80_p8 }
   0xd   : > { %v97_v0 = vld [vmem:[%s3184_s0 + $0x10] sm:$0xff] (!%p81_p9)  ;;  %v95_v1 = vld [vmem:[%s3184_s0] sm:$0xff] (!%p81_p9)  ;;  %v2241_v2 = vmov (!%p81_p9), 0   ;;  %v98_v3 = vld [vmem:[%s3184_s0 + $0x18] sm:$0xff] (!%p81_p9)  ;;  %v2242_v9 = vmov (!%p81_p9), 1   ;;  %v2243_v10 = vmov (!%p81_p9), 2   ;;  %v104_v11 = vlaneseq (!%p81_p9) }
   0xe   : > { %84 = sbr.rel (%p81_p9) target bundleno = 442 (0x1ba), region = 24  ;;  %2140 = vset.pattern.permute.xlu1 (!%p81_p9), %v2241_v2  ;;  %2139 = vset.pattern.permute.xlu0 (!%p81_p9), %v2241_v2  ;;  %v96_v4 = vld [vmem:[%s3184_s0 + $0x8] sm:$0xff] (!%p81_p9)  ;;  %v99_v6 = vld [vmem:[%s3184_s0 + $0x20] sm:$0xff] (!%p81_p9)  ;;  %v102_v7 = vld [vmem:[%s3184_s0 + $0x38] sm:$0xff] (!%p81_p9)  ;;  %s2337_s5 = sshll.u32 (!%p81_p9), %s1982_s10, 7 }
   0xf   : > { %124 = vperm.xlu1 (!%p81_p9), %2140, %v97_v0   ;;  %114 = vperm.xlu0 (!%p81_p9), %2139, %v95_v1   ;;  %v100_v5 = vld [vmem:[%s3184_s0 + $0x28] sm:$0xff] (!%p81_p9)  ;;  %v101_v8 = vld [vmem:[%s3184_s0 + $0x30] sm:$0xff] (!%p81_p9)  ;;  %v105_v12 = vand.u32 (!%p81_p9), 127, %v104_v11  ;;  %v106_v13 = vstv (!%p81_p9), %s2337_s5  ;;  %s92_s10 = sand.u32 (!%p81_p9), 1, %s2231_s7   ;;  %s3134_s20 = scalar_lea.hbm (!%p81_p9), %s3185_s1, %s2337_s5 }
  0x10   : > { %s2602_s11 = sshll.u32 (!%p81_p9), %s92_s10, 7  ;;  %s3143_s21 = scalar_lea.sflag (!%p81_p9), [#allocation3], %s92_s10 }
  0x11   : > { %v107_v14 = vadd.s32 (!%p81_p9), %v106_v13, %v105_v12  ;;  %s2646_s13 = scalar_lea.vmem (!%p81_p9), [#allocation2], %s2602_s11  ;;  %s2250_s23 = smov (!%p81_p9), [#allocation2]  }
  0x12   : > { %s1933_s14 = sshll.u32 (!%p81_p9), %s2646_s13, 4  ;;  %s2181_s24 = sshll.u32 (!%p81_p9), %s2250_s23, 4  ;;  %s3136_s14 = int_to_ptr.vmem [resolvable:$true] %s1933_s14  ;;  %s2182_s24 = int_to_ptr.vmem [resolvable:$false] %s2181_s24 }
  0x13   : > { %129 = vperm.xlu1 (!%p81_p9), %2140, %v98_v3   ;;  %119 = vperm.xlu0 (!%p81_p9), %2139, %v96_v4   ;;  %v110_v15 = vand.u32 (!%p81_p9), 15, %v107_v14  ;;  %v108_v30 = vshra.s32 (!%p81_p9), %v107_v14, 4  ;;  %s2177_s22 = scalar_lea.vmem (!%p81_p9), %s3136_s14, 2048  ;;  %s2183_s25 = scalar_lea.vmem (!%p81_p9), %s2182_s24, 4096 }
  0x14   : > { %p2178_p10 = scmp.ne.s32.totalorder (!%p81_p9), %s3136_s14, %s2177_s22  ;;  %p2184_p13 = scmp.lt.s32.totalorder (!%p81_p9), %s3136_s14, %s2182_s24 }
  0x15   : > { %v111_v18 = vcvt.s32.f32 %v110_v15  ;;  %v109_v33 = vcvt.s32.f32 %v108_v30  ;;  %p2185_p0 = scmp.lt.s32.totalorder %s2183_s25, %s2177_s22 }
  0x16   : > { %p2179_p11 = pnand %p2178_p10, %p2301_p5 }
  0x17   : > { %139 = vperm.xlu1 %2140, %v100_v5   ;;  %134 = vperm.xlu0 %2139, %v99_v6   ;;  %p2186_p1 = por %p2185_p0, %p2184_p13 }
  0x18   : > { %p2180_p12 = pneg %p2179_p11 }
  0x1a   : > { %p2187_p2 = pnand %p2186_p1, %p2180_p12 }
  0x1b   : > { %149 = vperm.xlu1 %2140, %v102_v7   ;;  %144 = vperm.xlu0 %2139, %v101_v8  }
  0x1f   : > { %2142 = vset.pattern.permute.xlu1 %v2242_v9  ;;  %2141 = vset.pattern.permute.xlu0 %v2242_v9 }
  0x20   : > { %165 = vperm.xlu1 %2142, %v96_v4   ;;  %161 = vperm.xlu0 %2141, %v95_v1  }
  0x24   : > { %169 = vperm.xlu1 %2142, %v97_v0   ;;  %173 = vperm.xlu0 %2141, %v98_v3  }
  0x28   : > { %177 = vperm.xlu1 %2142, %v99_v6   ;;  %181 = vperm.xlu0 %2141, %v100_v5  }
  0x2c   : > { %185 = vperm.xlu1 %2142, %v101_v8   ;;  %189 = vperm.xlu0 %2141, %v102_v7  }
  0x30   : > { %2143 = vset.pattern.permute.xlu1 %v2243_v10  ;;  %2144 = vset.pattern.permute.xlu0 %v2243_v10 }
  0x31   : > { %209 = vperm.xlu1 %2143, %v95_v1   ;;  %213 = vperm.xlu0 %2144, %v96_v4  }
  0x35   : > { %217 = vperm.xlu1 %2143, %v97_v0   ;;  %225 = vperm.xlu0 %2144, %v99_v6  }
  0x39   : > { %221 = vperm.xlu1 %2143, %v98_v3   ;;  %233 = vperm.xlu0 %2144, %v101_v8  }
  0x3d   : > { %229 = vperm.xlu1 %2143, %v100_v5  }
  0x41   : > { %237 = vperm.xlu1 %2143, %v102_v7  }
  0x8e   : > { %v125_v16 = vpop.permute.xlu1 %124  ;;  %v115_v17 = vpop.permute.xlu0 %114 }
  0x8f   : > { %v152_v50 = vmul.f32 %v115_v17, %v111_v18  ;;  %v154_v58 = vmul.f32 %v125_v16, %v111_v18 }
  0x92   : > { %v130_v19 = vpop.permute.xlu1 %129  ;;  %v120_v20 = vpop.permute.xlu0 %119 }
  0x93   : > { %v155_v21 = vmul.f32 %v130_v19, %v111_v18  ;;  %v153_v51 = vmul.f32 %v120_v20, %v111_v18 }
  0x96   : > { %v140_v22 = vpop.permute.xlu1 %139  ;;  %v135_v23 = vpop.permute.xlu0 %134 }
  0x97   : > { %v157_v24 = vmul.f32 %v140_v22, %v111_v18  ;;  %v156_v25 = vmul.f32 %v135_v23, %v111_v18 }
  0x9a   : > { %v150_v26 = vpop.permute.xlu1 %149  ;;  %v145_v27 = vpop.permute.xlu0 %144 }
  0x9b   : > { %v2340_v28 = vmul.f32 %v150_v26, %v111_v18  ;;  %v158_v29 = vmul.f32 %v145_v27, %v111_v18 }
  0x9f   : > { %v166_v31 = vpop.permute.xlu1 %165  ;;  %v162_v32 = vpop.permute.xlu0 %161 }
  0xa0   : > { %v193_v44 = vmul.f32 %v166_v31, %v109_v33  ;;  %v192_v45 = vmul.f32 %v162_v32, %v109_v33 }
  0xa2   : > { %v200_v54 = vadd.f32 %v192_v45, %v152_v50  ;;  %v201_v55 = vadd.f32 %v193_v44, %v153_v51 }
  0xa3   : > { %v170_v34 = vpop.permute.xlu1 %169  ;;  %v174_v35 = vpop.permute.xlu0 %173 }
  0xa4   : > { %v195_v36 = vmul.f32 %v174_v35, %v109_v33  ;;  %v194_v53 = vmul.f32 %v170_v34, %v109_v33  ;;  %v2246_v35 = vmov 2131351028  }
  0xa6   : > { %v2342_v37 = vadd.f32 %v195_v36, %v155_v21  ;;  %v202_v63 = vadd.f32 %v194_v53, %v154_v58 }
  0xa7   : > { %v178_v38 = vpop.permute.xlu1 %177  ;;  %v182_v39 = vpop.permute.xlu0 %181 }
  0xa8   : > { %v196_v40 = vmul.f32 %v178_v38, %v109_v33  ;;  %v197_v41 = vmul.f32 %v182_v39, %v109_v33  ;;  %v2247_v38 = vmov 2102212464  }
  0xaa   : > { %v204_v42 = vadd.f32 %v196_v40, %v156_v25  ;;  %v2344_v43 = vadd.f32 %v197_v41, %v157_v24  ;;  %v2248_v40 = vmov 920167782  }
  0xab   : > { %v186_v46 = vpop.permute.xlu1 %185  ;;  %v190_v47 = vpop.permute.xlu0 %189 }
  0xac   : > { %v198_v48 = vmul.f32 %v186_v46, %v109_v33  ;;  %v2346_v49 = vmul.f32 %v190_v47, %v109_v33  ;;  %v2245_v33 = vmov 2475754826  }
  0xae   : > { %v2348_v52 = vadd.f32 %v198_v48, %v158_v29  ;;  %v2244_v29 = vmov 683565275   ;;  %v2249_v48 = vmov 1326507024  }
  0xb0   : > { %v210_v56 = vpop.permute.xlu1 %209  ;;  %v214_v57 = vpop.permute.xlu0 %213 }
  0xb1   : > { %v2350_v59 = vadd.f32 %v210_v56, %v200_v54  ;;  %v2352_v60 = vadd.f32 %v214_v57, %v201_v55 }
  0xb3   : > { %v248_v61 = vand.u32 2147483647, %v2350_v59  ;;  %v251_v62 = vand.u32 2139095040, %v2350_v59  ;;  %v352_v0 = vand.u32 2147483647, %v2352_v60  ;;  %v355_v1 = vand.u32 2139095040, %v2352_v60 }
  0xb4   : > { %v218_v2 = vpop.permute.xlu1 %217  ;;  %v226_v16 = vpop.permute.xlu0 %225  ;;  %vm250_vm14 = vcmp.lt.s32.totalorder %v2350_v59, 0 }
  0xb5   : > { %v252_v3 = vshrl.u32 %v251_v62, 23  ;;  %v2358_v4 = vadd.f32 %v218_v2, %v202_v63  ;;  %v255_v5 = vand.u32 8388607, %v248_v61  ;;  %v356_v6 = vshrl.u32 %v355_v1, 23 }
  0xb6   : > { %v359_v7 = vand.u32 8388607, %v352_v0  ;;  %v2365_v22 = vadd.f32 %v226_v16, %v204_v42  ;;  %vm2448_vm13 = vcmp.le.f32.partialorder %v248_v61, 0.7853982 }
  0xb7   : > { %v1988_v8 = vadd.s32 4294967169, %v252_v3  ;;  %v1992_v9 = vadd.s32 4294967169, %v356_v6  ;;  %v459_v10 = vand.u32 2139095040, %v2358_v4  ;;  %v256_v12 = vor.u32 8388608, %v255_v5 }
  0xb8   : > { %v360_v13 = vor.u32 8388608, %v359_v7  ;;  %v456_v26 = vand.u32 2147483647, %v2358_v4 }
  0xb9   : > { %v258_v11 = vadd.s32 1, %v1988_v8  ;;  %v362_v14 = vadd.s32 1, %v1992_v9  ;;  %v460_v15 = vshrl.u32 %v459_v10, 23  ;;  %v2367_v23 = vshll.u32 %v256_v12, 8 }
  0xba   : > { %v2371_v25 = vshll.u32 %v360_v13, 8 }
  0xbb   : > { %vm259_vm0 = vcmp.gt.s32.totalorder %v258_v11, 0  ;;  %vm363_vm1 = vcmp.gt.s32.totalorder %v362_v14, 0  ;;  %v1996_v18 = vadd.s32 4294967169, %v460_v15 }
  0xbc   : > { %v260_v17 = vsel %vm259_vm0, %v258_v11, 0  ;;  %v364_v21 = vsel %vm363_vm1, %v362_v14, 0  ;;  %vm354_vm0 = vcmp.lt.s32.totalorder %v2352_v60, 0 }
  0xbd   : > { %v261_v19 = vshrl.u32 %v260_v17, 5  ;;  %v262_v20 = vand.u32 31, %v260_v17  ;;  %v2369_v24 = vshrl.u32 %v364_v21, 5  ;;  %v366_v31 = vand.u32 31, %v364_v21 }
  0xbe   : > { %v2375_v32 = vadd.s32 1, %v1996_v18 }
  0xbf   : > { %v263_v27 = vsub.s32 32, %v262_v20  ;;  %v265_v30 = vshll.u32 %v2244_v29, %v262_v20  ;;  %v268_v34 = vshll.u32 %v2245_v33, %v262_v20  ;;  %v271_v36 = vshll.u32 %v2246_v35, %v262_v20 }
  0xc0   : > { %v274_v39 = vshll.u32 %v2247_v38, %v262_v20  ;;  %v277_v41 = vshll.u32 %v2248_v40, %v262_v20  ;;  %vm280_vm2 = vcmp.lt.s32.totalorder %v261_v19, 1  ;;  %vm281_vm3 = vcmp.lt.s32.totalorder %v261_v19, 2 }
  0xc1   : > { %v266_v42 = vshrl.u32 %v2245_v33, %v263_v27  ;;  %v269_v44 = vshrl.u32 %v2246_v35, %v263_v27  ;;  %v272_v45 = vshrl.u32 %v2247_v38, %v263_v27  ;;  %v264_v46 = vshrl.u32 %v2244_v29, %v263_v27 }
  0xc2   : > { %v275_v47 = vshrl.u32 %v2248_v40, %v263_v27  ;;  %v278_v50 = vshrl.u32 %v2249_v48, %v263_v27  ;;  %v367_v55 = vsub.s32 32, %v366_v31  ;;  %vm282_vm4 = vcmp.lt.s32.totalorder %v261_v19, 3 }
  0xc3   : > { %v267_v51 = vor.u32 %v266_v42, %v265_v30  ;;  %v270_v53 = vor.u32 %v269_v44, %v268_v34  ;;  %v273_v54 = vor.u32 %v272_v45, %v271_v36  ;;  %vm283_vm5 = vcmp.lt.s32.totalorder %v261_v19, 4 }
  0xc4   : > { %v276_v56 = vor.u32 %v275_v47, %v274_v39  ;;  %v279_v57 = vor.u32 %v278_v50, %v277_v41  ;;  %v369_v6 = vshll.u32 %v2244_v29, %v366_v31  ;;  %v370_v9 = vshrl.u32 %v2245_v33, %v367_v55 }
  0xc5   : > { %v284_v58 = vsel %vm280_vm2, %v264_v46, %v267_v51  ;;  %v285_v62 = vsel %vm283_vm5, %v273_v54, 2102212464  ;;  %v288_v63 = vsel %vm280_vm2, %v267_v51, %v270_v53  ;;  %v292_v1 = vsel %vm280_vm2, %v270_v53, %v273_v54 }
  0xc6   : > { %v286_v2 = vsel %vm282_vm4, %v270_v53, %v285_v62  ;;  %v289_v3 = vsel %vm283_vm5, %v276_v56, 920167782  ;;  %v293_v5 = vsel %vm283_vm5, %v279_v57, 1326507024  ;;  %v372_v10 = vshll.u32 %v2245_v33, %v366_v31 }
  0xc7   : > { %v290_v7 = vsel %vm282_vm4, %v273_v54, %v289_v3  ;;  %v294_v8 = vsel %vm282_vm4, %v276_v56, %v293_v5  ;;  %v287_v11 = vsel %vm281_vm3, %v284_v58, %v286_v2  ;;  %v373_v14 = vshrl.u32 %v2246_v35, %v367_v55 }
  0xc8   : > { %v291_v12 = vsel %vm281_vm3, %v288_v63, %v290_v7  ;;  %v295_v13 = vsel %vm281_vm3, %v292_v1, %v294_v8  ;;  %v371_v20 = vor.u32 %v370_v9, %v369_v6  ;;  %v375_v27 = vshll.u32 %v2246_v35, %v366_v31 }
  0xc9   : > { %v2398_v15 = vmul.u32.u64.low %v2367_v23, %v295_v13  ;;  %v2399_v16 = vmul.u32.u64.high %v2367_v23, %v295_v13, %v2398_v15  ;;  %v2402_v17 = vmul.u32.u64.low %v2367_v23, %v291_v12  ;;  %v2403_v18 = vmul.u32.u64.high %v2367_v23, %v291_v12, %v2402_v17 }
  0xca   : > { %v374_v21 = vor.u32 %v373_v14, %v372_v10  ;;  %v376_v30 = vshrl.u32 %v2247_v38, %v367_v55  ;;  %v368_v19 = vshrl.u32 %v2244_v29, %v367_v55  ;;  %v378_v34 = vshll.u32 %v2247_v38, %v366_v31 }
  0xcb   : > { %v379_v36 = vshrl.u32 %v2248_v40, %v367_v55  ;;  %v382_v39 = vshrl.u32 %v2249_v48, %v367_v55  ;;  %v303_v41 = vmul.u32 %v2367_v23, %v287_v11  ;;  %v381_v44 = vshll.u32 %v2248_v40, %v366_v31 }
  0xcc   : > { %v377_v42 = vor.u32 %v376_v30, %v375_v27  ;;  %vm384_vm6 = vcmp.lt.s32.totalorder %v2369_v24, 1  ;;  %vm305_vm7 = vc.u32 %v2399_v16, %v2402_v17  ;;  %v306_v45 = vadd.s32 1, %v2403_v18 }
  0xcd   : > { %v380_v46 = vor.u32 %v379_v36, %v378_v34  ;;  %vm385_vm8 = vcmp.lt.s32.totalorder %v2369_v24, 2  ;;  %v383_v47 = vor.u32 %v382_v39, %v381_v44  ;;  %vm386_vm9 = vcmp.lt.s32.totalorder %v2369_v24, 3 }
  0xce   : > { %vm387_vm10 = vcmp.lt.s32.totalorder %v2369_v24, 4  ;;  %v392_v50 = vsel %vm384_vm6, %v371_v20, %v374_v21  ;;  %v307_v23 = vsel %vm305_vm7, %v306_v45, %v2403_v18  ;;  %v396_v53 = vsel %vm384_vm6, %v374_v21, %v377_v42 }
  0xcf   : > { %v389_v51 = vsel %vm387_vm10, %v377_v42, 2102212464  ;;  %v393_v31 = vsel %vm387_vm10, %v380_v46, 920167782  ;;  %v308_v54 = vadd.s32 %v307_v23, %v303_v41  ;;  %v388_v55 = vsel %vm384_vm6, %v368_v19, %v371_v20 }
  0xd0   : > { %v394_v56 = vsel %vm386_vm9, %v377_v42, %v393_v31  ;;  %v397_v57 = vsel %vm387_vm10, %v383_v47, 1326507024  ;;  %v390_v58 = vsel %vm386_vm9, %v374_v21, %v389_v51  ;;  %vm467_vm11 = vcmp.gt.s32.totalorder %v2375_v32, 0 }
  0xd1   : > { %v395_v62 = vsel %vm385_vm8, %v392_v50, %v394_v56  ;;  %v398_v63 = vsel %vm386_vm9, %v380_v46, %v397_v57  ;;  %v309_v1 = vadd.s32 536870912, %v308_v54  ;;  %v391_v9 = vsel %vm385_vm8, %v388_v55, %v390_v58 }
  0xd2   : > { %v399_v2 = vsel %vm385_vm8, %v396_v53, %v398_v63  ;;  %v2428_v3 = vmul.u32.u64.low %v2371_v25, %v395_v62  ;;  %v2429_v5 = vmul.u32.u64.high %v2371_v25, %v395_v62, %v2428_v3  ;;  %v463_v10 = vand.u32 8388607, %v456_v26 }
  0xd3   : > { %v2432_v6 = vmul.u32.u64.low %v2371_v25, %v399_v2  ;;  %v2433_v7 = vmul.u32.u64.high %v2371_v25, %v399_v2, %v2432_v6  ;;  %v310_v8 = vshrl.u32 %v309_v1, 30  ;;  %v468_v11 = vsel %vm467_vm11, %v2375_v32, 0 }
  0xd4   : > { %v410_v13 = vadd.s32 1, %v2429_v5  ;;  %v667_v14 = vand.u32 2139095040, %v2365_v22  ;;  %v407_v15 = vmul.u32 %v2371_v25, %v391_v9  ;;  %v470_v21 = vand.u32 31, %v468_v11 }
  0xd5   : > { %v311_v12 = vshll.u32 %v310_v8, 30  ;;  %vm409_vm12 = vc.u32 %v2433_v7, %v2428_v3  ;;  %v464_v27 = vor.u32 8388608, %v463_v10  ;;  %v334_v34 = vsub.s32 4, %v310_v8 }
  0xd6   : > { %v411_v20 = vsel %vm409_vm12, %v410_v13, %v2429_v5  ;;  %v668_v19 = vshrl.u32 %v667_v14, 23  ;;  %v664_v32 = vand.u32 2147483647, %v2365_v22  ;;  %v471_v41 = vsub.s32 32, %v470_v21 }
  0xd7   : > { %v312_v18 = vsub.s32 %v308_v54, %v311_v12  ;;  %v412_v24 = vadd.s32 %v411_v20, %v407_v15  ;;  %v2455_v44 = vshll.u32 %v464_v27, 8  ;;  %v304_v45 = vadd.s32 %v2402_v17, %v2399_v16 }
  0xd8   : > { %v2459_v47 = vshrl.u32 %v468_v11, 5  ;;  %v2461_v50 = vadd.s32 4294967169, %v668_v19  ;;  %v335_v61 = vsel %vm250_vm14, %v334_v34, %v310_v8  ;;  %v2466_v23 = vadd.s32 %v2428_v3, %v2433_v7 }
  0xd9   : > { %v314_v30 = vsub.s32 0, %v312_v18  ;;  %v413_v36 = vadd.s32 536870912, %v412_v24  ;;  %v2471_v31 = vand.u32 8388607, %v664_v32  ;;  %v473_v16 = vshll.u32 %v2244_v29, %v470_v21 }
  0xda   : > { %v474_v17 = vshrl.u32 %v2245_v33, %v471_v41  ;;  %v476_v54 = vshll.u32 %v2245_v33, %v470_v21  ;;  %v477_v56 = vshrl.u32 %v2246_v35, %v471_v41  ;;  %v480_v57 = vshrl.u32 %v2247_v38, %v471_v41 }
  0xdb   : > { %v1989_v39 = vmin.u32 %v314_v30, %v312_v18  ;;  %v2453_v42 = vshrl.u32 %v413_v36, 30  ;;  %v483_v58 = vshrl.u32 %v2248_v40, %v471_v41  ;;  %v2483_v62 = vsel %vm2448_vm13, 0, %v335_v61 }
  0xdc   : > { %v472_v63 = vshrl.u32 %v2244_v29, %v471_v41  ;;  %v486_v1 = vshrl.u32 %v2249_v48, %v471_v41  ;;  %v479_v5 = vshll.u32 %v2246_v35, %v470_v21  ;;  %v482_v6 = vshll.u32 %v2247_v38, %v470_v21 }
  0xdd   : > { %v316_v46 = vclz %v1989_v39  ;;  %v415_v51 = vshll.u32 %v2453_v42, 30  ;;  %v475_v9 = vor.u32 %v474_v17, %v473_v16  ;;  %v485_v10 = vshll.u32 %v2248_v40, %v470_v21 }
  0xde   : > { %v478_v12 = vor.u32 %v477_v56, %v476_v54  ;;  %v481_v13 = vor.u32 %v480_v57, %v479_v5  ;;  %v484_v14 = vor.u32 %v483_v58, %v482_v6  ;;  %v438_v19 = vsub.s32 4, %v2453_v42 }
  0xdf   : > { %v1990_v53 = vadd.s32 4294967294, %v316_v46  ;;  %v2476_v55 = vsub.s32 %v412_v24, %v415_v51  ;;  %v487_v27 = vor.u32 %v486_v1, %v485_v10  ;;  %vm488_vm1 = vcmp.lt.s32.totalorder %v2459_v47, 1 }
  0xe0   : > { %vm489_vm2 = vcmp.lt.s32.totalorder %v2459_v47, 2  ;;  %vm490_vm3 = vcmp.lt.s32.totalorder %v2459_v47, 3  ;;  %vm491_vm4 = vcmp.lt.s32.totalorder %v2459_v47, 4  ;;  %v500_v41 = vsel %vm488_vm1, %v478_v12, %v481_v13 }
  0xe1   : > { %vm1991_vm15 = vcmp.lt.s32.totalorder %v1990_v53, 0  ;;  %v418_v3 = vsub.s32 0, %v2476_v55  ;;  %v497_v39 = vsel %vm491_vm4, %v484_v14, 920167782  ;;  %vm2504_vm5 = vcmp.le.f32.partialorder %v352_v0, 0.7853982 }
  0xe2   : > { %v319_v2 = vsel %vm1991_vm15, 0, %v1990_v53  ;;  %v493_v61 = vsel %vm491_vm4, %v481_v13, 2102212464  ;;  %v498_v51 = vsel %vm490_vm3, %v481_v13, %v497_v39  ;;  %v501_v53 = vsel %vm491_vm4, %v487_v27, 1326507024 }
  0xe3   : > { %v320_v7 = vsub.s32 32, %v319_v2  ;;  %v324_v8 = vsub.s32 4294967266, %v319_v2  ;;  %v1993_v11 = vmin.u32 %v418_v3, %v2476_v55  ;;  %v321_v15 = vshll.u32 %v312_v18, %v319_v2 }
  0xe4   : > { %v496_v18 = vsel %vm488_vm1, %v475_v9, %v478_v12  ;;  %v492_v17 = vsel %vm488_vm1, %v472_v63, %v475_v9  ;;  %v502_v54 = vsel %vm490_vm3, %v484_v14, %v501_v53  ;;  %v494_v3 = vsel %vm490_vm3, %v478_v12, %v493_v61  ;;  %v222_v14 = vpop.permute.xlu1 %221 }
  0xe5   : > { %v322_v20 = vshrl.u32 %v304_v45, %v320_v7  ;;  %v325_v24 = vadd.s32 127, %v324_v8  ;;  %v420_v30 = vclz %v1993_v11  ;;  %v499_v0 = vsel %vm489_vm2, %v496_v18, %v498_v51 }
  0xe6   : > { %v503_v58 = vsel %vm489_vm2, %v500_v41, %v502_v54  ;;  %v674_v5 = vadd.s32 1, %v2461_v50  ;;  %v2528_v11 = vmul.u32.u64.low %v2455_v44, %v499_v0  ;;  %v2529_v13 = vmul.u32.u64.high %v2455_v44, %v499_v0, %v2528_v11 }
  0xe7   : > { %v323_v34 = vor.u32 %v322_v20, %v321_v15  ;;  %v326_v21 = vshll.u32 %v325_v24, 23  ;;  %v1994_v36 = vadd.s32 4294967294, %v420_v30  ;;  %v341_v12 = vadd.s32 3, %v2483_v62 }
  0xe8   : > { %v2523_v7 = vmul.u32.u64.low %v2455_v44, %v503_v58  ;;  %v2524_v8 = vmul.u32.u64.high %v2455_v44, %v503_v58, %v2523_v7  ;;  %v439_v50 = vsel %vm354_vm0, %v438_v19, %v2453_v42  ;;  %vm675_vm7 = vcmp.gt.s32.totalorder %v674_v5, 0 }
  0xe9   : > { %v327_v45 = vor.u32 4788187, %v326_v21  ;;  %v330_v16 = vcvt.s32.f32 %v323_v34  ;;  %vm1995_vm6 = vcmp.lt.s32.totalorder %v1994_v36, 0  ;;  %v676_v24 = vsel %vm675_vm7, %v674_v5, 0 }
  0xea   : > { %v423_v57 = vsel %vm1995_vm6, 0, %v1994_v36  ;;  %v2541_v30 = vand.u32 3, %v2483_v62  ;;  %vm513_vm8 = vc.u32 %v2524_v8, %v2528_v11  ;;  %v2546_v34 = vadd.f32 %v222_v14, %v2342_v37 }
  0xeb   : > { %v328_v56 = vand.u32 2147483647, %v327_v45  ;;  %v424_v1 = vsub.s32 32, %v423_v57  ;;  %v428_v2 = vsub.s32 4294967266, %v423_v57  ;;  %v425_v63 = vshll.u32 %v2476_v55, %v423_v57 }
  0xec   : > { %v441_v47 = vsel %vm2504_vm5, 0, %v439_v50  ;;  %v514_v21 = vadd.s32 1, %v2529_v13  ;;  %v2554_v36 = vand.u32 3, %v341_v12  ;;  %v678_v18 = vand.u32 31, %v676_v24 }
  0xed   : > { %v331_v6 = vmul.f32 %v330_v16, %v328_v56  ;;  %v426_v9 = vshrl.u32 %v2466_v23, %v424_v1  ;;  %v429_v10 = vadd.s32 127, %v428_v2  ;;  %v495_v23 = vsel %vm489_vm2, %v492_v17, %v494_v3 }
  0xee   : > { %v511_v62 = vmul.u32 %v2455_v44, %v495_v23  ;;  %v515_v41 = vsel %vm513_vm8, %v514_v21, %v2529_v13  ;;  %v445_v45 = vadd.s32 3, %v441_v47  ;;  %v672_v61 = vor.u32 8388608, %v2471_v31 }
  0xef   : > { %v332_v15 = vxor.u32 2147483648, %v331_v6  ;;  %v427_v55 = vor.u32 %v426_v9, %v425_v63  ;;  %v430_v20 = vshll.u32 %v429_v10, 23  ;;  %v679_v51 = vsub.s32 32, %v678_v18 }
  0xf0   : > { %v516_v25 = vadd.s32 %v515_v41, %v511_v62  ;;  %v2559_v16 = vand.u32 3, %v441_v47  ;;  %v2561_v17 = vshrl.u32 %v676_v24, 5  ;;  %v681_v54 = vshll.u32 %v2244_v29, %v678_v18 }
  0xf1   : > { %v333_v27 = vsel %vm250_vm14, %v332_v15, %v331_v6  ;;  %v431_v19 = vor.u32 4788187, %v430_v20  ;;  %v434_v37 = vcvt.s32.f32 %v427_v55  ;;  %vm347_vm9 = vcmp.eq.s32.totalorder %v2554_v36, 2 }
  0xf2   : > { %v336_v42 = vsel %vm2448_vm13, %v2350_v59, %v333_v27  ;;  %vm1186_vm10 = vcmp.eq.s32.totalorder %v2541_v30, 2  ;;  %v517_v44 = vadd.s32 536870912, %v516_v25  ;;  %v682_v56 = vshrl.u32 %v2245_v33, %v679_v51 }
  0xf3   : > { %2145 = vcosq.f32 %v336_v42  ;;  %v432_v39 = vand.u32 2147483647, %v431_v19  ;;  %v685_v57 = vshrl.u32 %v2246_v35, %v679_v51  ;;  %v687_v0 = vshll.u32 %v2246_v35, %v678_v18 }
  0xf4   : > { %2147 = vsinq.f32 %v336_v42  ;;  %vm344_vm11 = vcmp.eq.s32.totalorder %v2554_v36, 0  ;;  %vm1183_vm12 = vcmp.eq.s32.totalorder %v2541_v30, 0  ;;  %v688_v58 = vshrl.u32 %v2247_v38, %v679_v51 }
  0xf5   : > { %v435_v53 = vmul.f32 %v434_v37, %v432_v39  ;;  %v690_v1 = vshll.u32 %v2247_v38, %v678_v18  ;;  %v691_v2 = vshrl.u32 %v2248_v40, %v679_v51  ;;  %vm343_vm13 = vcmp.lt.s32.totalorder %v2554_v36, 2 }
  0xf6   : > { %vm1182_vm14 = vcmp.lt.s32.totalorder %v2541_v30, 2  ;;  %v2576_v3 = vand.u32 3, %v445_v45  ;;  %v2578_v5 = vshrl.u32 %v517_v44, 30  ;;  %v684_v6 = vshll.u32 %v2245_v33, %v678_v18 }
  0xf7   : > { %v436_v31 = vxor.u32 2147483648, %v435_v53  ;;  %v2581_v63 = vshll.u32 %v672_v61, 8  ;;  %vm340_vm15 = vweird.f32 %v2350_v59  ;;  %v683_v9 = vor.u32 %v682_v56, %v681_v54 }
  0xf8   : > { %v689_v10 = vor.u32 %v688_v58, %v687_v0  ;;  %v692_v13 = vor.u32 %v691_v2, %v690_v1  ;;  %v519_v15 = vshll.u32 %v2578_v5, 30  ;;  %v686_v12 = vor.u32 %v685_v57, %v684_v6 }
  0xf9   : > { %v437_v7 = vsel %vm354_vm0, %v436_v31, %v435_v53  ;;  %vm699_vm1 = vcmp.lt.s32.totalorder %v2561_v17, 4  ;;  %v694_v50 = vshrl.u32 %v2249_v48, %v679_v51  ;;  %vm696_vm2 = vcmp.lt.s32.totalorder %v2561_v17, 1 }
  0xfa   : > { %v440_v14 = vsel %vm2504_vm5, %v2352_v60, %v437_v7  ;;  %v705_v55 = vsel %vm699_vm1, %v692_v13, 920167782  ;;  %v2596_v23 = vsub.s32 %v516_v25, %v519_v15  ;;  %vm697_vm0 = vcmp.lt.s32.totalorder %v2561_v17, 2 }
  0xfb   : > { %2149 = vcosq.f32 %v440_v14  ;;  %vm698_vm3 = vcmp.lt.s32.totalorder %v2561_v17, 3  ;;  %v680_v27 = vshrl.u32 %v2244_v29, %v679_v51  ;;  %v693_v42 = vshll.u32 %v2248_v40, %v678_v18 }
  0xfc   : > { %2151 = vsinq.f32 %v440_v14  ;;  %v701_v19 = vsel %vm699_vm1, %v689_v10, 2102212464  ;;  %vm458_vm4 = vcmp.lt.s32.totalorder %v2358_v4, 0  ;;  %v522_v21 = vsub.s32 0, %v2596_v23 }
  0xfd   : > { %v2146_v20 = vpop.eup %2145  ;;  %v704_v62 = vsel %vm696_vm2, %v683_v9, %v686_v12  ;;  %v706_v39 = vsel %vm698_vm3, %v689_v10, %v705_v55  ;;  %vm1289_vm5 = vcmp.eq.s32.totalorder %v2559_v16, 2  ;;  %v695_v41 = vor.u32 %v694_v50, %v693_v42 }
  0xfe   : > { %v2148_v46 = vpop.eup %2147  ;;  %v348_v24 = vxor.u32 2147483648, %v2146_v20  ;;  %v700_v45 = vsel %vm696_vm2, %v680_v27, %v683_v9  ;;  %vm1286_vm6 = vcmp.eq.s32.totalorder %v2559_v16, 0  ;;  %v1997_v51 = vmin.u32 %v522_v21, %v2596_v23 }
  0xff   : > { %v345_v47 = vxor.u32 2147483648, %v2148_v46  ;;  %v702_v53 = vsel %vm698_vm3, %v686_v12, %v701_v19  ;;  %vm447_vm7 = vcmp.lt.s32.totalorder %v2576_v3, 2  ;;  %vm1285_vm8 = vcmp.lt.s32.totalorder %v2559_v16, 2 }
 0x100   : > { %v349_v37 = vsel %vm347_vm9, %v348_v24, %v2148_v46  ;;  %v1188_v18 = vsel %vm1186_vm10, %v348_v24, %v2148_v46  ;;  %v707_v56 = vsel %vm697_vm0, %v704_v62, %v706_v39  ;;  %v563_v57 = vand.u32 2139095040, %v2546_v34 }
 0x101   : > { %v346_v25 = vsel %vm344_vm11, %v2146_v20, %v345_v47  ;;  %v1185_v61 = vsel %vm1183_vm12, %v2146_v20, %v345_v47  ;;  %vm444_vm9 = vweird.f32 %v2352_v60  ;;  %v524_v36 = vclz %v1997_v51 }
 0x102   : > { %v350_v54 = vsel %vm343_vm13, %v346_v25, %v349_v37  ;;  %v1189_v44 = vsel %vm1182_vm14, %v1185_v61, %v1188_v18  ;;  %v708_v30 = vsel %vm696_vm2, %v686_v12, %v689_v10  ;;  %vm448_vm10 = vcmp.eq.s32.totalorder %v2576_v3, 0 }
 0x103   : > { %v351_v0 = vsel %vm340_vm15, nan, %v350_v54  ;;  %v1190_v31 = vsel %vm340_vm15, nan, %v1189_v44  ;;  %v542_v58 = vsub.s32 4, %v2578_v5  ;;  %v703_v59 = vsel %vm697_vm0, %v700_v45, %v702_v53 }
 0x104   : > { %1080 = vst [vmem:[%s2646_s13] sm:$0xff] %v351_v0  ;;  %1912 = vst [vmem:[%s2646_s13 + $0x40] sm:$0xff] %v1190_v31  ;;  %v709_v1 = vsel %vm699_vm1, %v695_v41, 1326507024  ;;  %v1998_v2 = vadd.s32 4294967294, %v524_v36  ;;  %v2659_v7 = vmul.u32.u64.low %v2581_v63, %v707_v56  ;;  %v2660_v9 = vmul.u32.u64.high %v2581_v63, %v707_v56, %v2659_v7  ;;  %v234_v36 = vpop.permute.xlu0 %233 }
 0x105   : > { %v710_v6 = vsel %vm698_vm3, %v692_v13, %v709_v1  ;;  %v2150_v10 = vpop.eup %2149  ;;  %vm451_vm11 = vcmp.eq.s32.totalorder %v2576_v3, 2  ;;  %v512_v14 = vadd.s32 %v2528_v11, %v2524_v8  ;;  %v564_v12 = vshrl.u32 %v563_v57, 23 }
 0x106   : > { %v711_v15 = vsel %vm697_vm0, %v708_v30, %v710_v6  ;;  %v2152_v50 = vpop.eup %2151  ;;  %v452_v55 = vxor.u32 2147483648, %v2150_v10  ;;  %vm1999_vm12 = vcmp.lt.s32.totalorder %v1998_v2, 0  ;;  %v543_v27 = vsel %vm458_vm4, %v542_v58, %v2578_v5 }
 0x107   : > { %v2669_v13 = vmul.u32.u64.low %v2581_v63, %v711_v15  ;;  %v2670_v20 = vmul.u32.u64.high %v2581_v63, %v711_v15, %v2669_v13  ;;  %v449_v46 = vxor.u32 2147483648, %v2152_v50  ;;  %v527_v24 = vsel %vm1999_vm12, 0, %v1998_v2 }
 0x108   : > { %v719_v42 = vmul.u32 %v2581_v63, %v703_v59  ;;  %v453_v8 = vsel %vm451_vm11, %v452_v55, %v2152_v50  ;;  %v1291_v11 = vsel %vm1289_vm5, %v452_v55, %v2152_v50  ;;  %v528_v17 = vsub.s32 32, %v527_v24 }
 0x109   : > { %v2000_v19 = vadd.s32 4294967169, %v564_v12  ;;  %v450_v47 = vsel %vm448_vm10, %v2150_v10, %v449_v46  ;;  %v1288_v21 = vsel %vm1286_vm6, %v2150_v10, %v449_v46  ;;  %v532_v62 = vsub.s32 4294967266, %v527_v24 }
 0x10a   : > { %v722_v39 = vadd.s32 1, %v2660_v9  ;;  %v454_v5 = vsel %vm447_vm7, %v450_v47, %v453_v8  ;;  %v1292_v63 = vsel %vm1285_vm8, %v1288_v21, %v1291_v11  ;;  %v529_v37 = vshll.u32 %v2596_v23, %v527_v24 }
 0x10b   : > { %v530_v18 = vshrl.u32 %v512_v14, %v528_v17  ;;  %v455_v41 = vsel %vm444_vm9, nan, %v454_v5  ;;  %v1293_v45 = vsel %vm444_vm9, nan, %v1292_v63  ;;  %v533_v25 = vadd.s32 127, %v532_v62 }
 0x10c   : > { %vm721_vm13 = vc.u32 %v2670_v20, %v2659_v7  ;;  %1081 = vst [vmem:[%s2646_s13 + $0x8] sm:$0xff] %v455_v41  ;;  %1913 = vst [vmem:[%s2646_s13 + $0x48] sm:$0xff] %v1293_v45  ;;  %vm2698_vm14 = vcmp.le.f32.partialorder %v456_v26, 0.7853982  ;;  %v560_v23 = vand.u32 2147483647, %v2546_v34  ;;  %v2712_v10 = vadd.f32 %v234_v36, %v2348_v52 }
 0x10d   : > { %v723_v3 = vsel %vm721_vm13, %v722_v39, %v2660_v9  ;;  %v570_v61 = vadd.s32 1, %v2000_v19  ;;  %v531_v51 = vor.u32 %v530_v18, %v529_v37  ;;  %v534_v60 = vshll.u32 %v533_v25, 23 }
 0x10e   : > { %v545_v53 = vsel %vm2698_vm14, 0, %v543_v27  ;;  %v724_v54 = vadd.s32 %v723_v3, %v719_v42  ;;  %v567_v26 = vand.u32 8388607, %v560_v23  ;;  %vm666_vm1 = vcmp.lt.s32.totalorder %v2365_v22, 0 }
 0x10f   : > { %vm571_vm15 = vcmp.gt.s32.totalorder %v570_v61, 0  ;;  %v535_v44 = vor.u32 4788187, %v534_v60  ;;  %v549_v0 = vadd.s32 3, %v545_v53  ;;  %v538_v58 = vcvt.s32.f32 %v531_v51 }
 0x110   : > { %v725_v56 = vadd.s32 536870912, %v724_v54  ;;  %v572_v57 = vsel %vm571_vm15, %v570_v61, 0  ;;  %v2708_v6 = vand.u32 3, %v545_v53  ;;  %v568_v15 = vor.u32 8388608, %v567_v26 }
 0x111   : > { %v574_v31 = vand.u32 31, %v572_v57  ;;  %v536_v30 = vand.u32 2147483647, %v535_v44  ;;  %v2714_v14 = vand.u32 3, %v549_v0  ;;  %v573_v12 = vshrl.u32 %v572_v57, 5 }
 0x112   : > { %v726_v59 = vshrl.u32 %v725_v56, 30  ;;  %vm2729_vm2 = vcmp.le.f32.partialorder %v664_v32, 0.7853982  ;;  %v720_v41 = vadd.s32 %v2659_v7, %v2670_v20  ;;  %v2744_v61 = vshll.u32 %v568_v15, 8 }
 0x113   : > { %v575_v1 = vsub.s32 32, %v574_v31  ;;  %v539_v2 = vmul.f32 %v538_v58, %v536_v30  ;;  %v577_v27 = vshll.u32 %v2244_v29, %v574_v31  ;;  %v580_v42 = vshll.u32 %v2245_v33, %v574_v31 }
 0x114   : > { %v727_v9 = vshll.u32 %v726_v59, 30  ;;  %v583_v52 = vshll.u32 %v2246_v35, %v574_v31  ;;  %v750_v47 = vsub.s32 4, %v726_v59  ;;  %v586_v21 = vshll.u32 %v2247_v38, %v574_v31 }
 0x115   : > { %v578_v50 = vshrl.u32 %v2245_v33, %v575_v1  ;;  %v540_v55 = vxor.u32 2147483648, %v539_v2  ;;  %v581_v46 = vshrl.u32 %v2246_v35, %v575_v1  ;;  %v584_v24 = vshrl.u32 %v2247_v38, %v575_v1 }
 0x116   : > { %v2717_v13 = vsub.s32 %v724_v54, %v727_v9  ;;  %v587_v8 = vshrl.u32 %v2248_v40, %v575_v1  ;;  %v589_v5 = vshll.u32 %v2248_v40, %v574_v31  ;;  %v590_v63 = vshrl.u32 %v2249_v48, %v575_v1 }
 0x117   : > { %v541_v11 = vsel %vm458_vm4, %v540_v55, %v539_v2  ;;  %v579_v39 = vor.u32 %v578_v50, %v577_v27  ;;  %v582_v37 = vor.u32 %v581_v46, %v580_v42  ;;  %v585_v18 = vor.u32 %v584_v24, %v583_v52 }
 0x118   : > { %v730_v19 = vsub.s32 0, %v2717_v13  ;;  %v544_v62 = vsel %vm2698_vm14, %v2358_v4, %v541_v11  ;;  %v588_v45 = vor.u32 %v587_v8, %v586_v21  ;;  %v591_v25 = vor.u32 %v590_v63, %v589_v5 }
 0x119   : > { %2153 = vcosq.f32 %v544_v62  ;;  %v576_v16 = vshrl.u32 %v2244_v29, %v575_v1  ;;  %v875_v51 = vand.u32 2139095040, %v2712_v10  ;;  %v751_v60 = vsel %vm666_vm1, %v750_v47, %v726_v59 }
 0x11a   : > { %v2005_v32 = vmin.u32 %v730_v19, %v2717_v13  ;;  %2155 = vsinq.f32 %v544_v62  ;;  %vm592_vm0 = vcmp.lt.s32.totalorder %v573_v12, 1  ;;  %vm594_vm3 = vcmp.lt.s32.totalorder %v573_v12, 3 }
 0x11b   : > { %vm595_vm4 = vcmp.lt.s32.totalorder %v573_v12, 4  ;;  %vm555_vm5 = vcmp.eq.s32.totalorder %v2714_v14, 2  ;;  %v596_v54 = vsel %vm592_vm0, %v576_v16, %v579_v39  ;;  %v600_v20 = vsel %vm592_vm0, %v579_v39, %v582_v37 }
 0x11c   : > { %v732_v3 = vclz %v2005_v32  ;;  %v597_v7 = vsel %vm595_vm4, %v585_v18, 2102212464  ;;  %vm552_vm6 = vcmp.eq.s32.totalorder %v2714_v14, 0  ;;  %vm1389_vm7 = vcmp.eq.s32.totalorder %v2708_v6, 0 }
 0x11d   : > { %v598_v44 = vsel %vm594_vm3, %v582_v37, %v597_v7  ;;  %v601_v56 = vsel %vm595_vm4, %v588_v45, 920167782  ;;  %v604_v57 = vsel %vm592_vm0, %v582_v37, %v585_v18  ;;  %v605_v0 = vsel %vm595_vm4, %v591_v25, 1326507024  ;;  %v230_v7 = vpop.permute.xlu1 %229 }
 0x11e   : > { %v2006_v53 = vadd.s32 4294967294, %v732_v3  ;;  %vm551_vm8 = vcmp.lt.s32.totalorder %v2714_v14, 2  ;;  %vm1388_vm9 = vcmp.lt.s32.totalorder %v2708_v6, 2  ;;  %vm593_vm11 = vcmp.lt.s32.totalorder %v573_v12, 2 }
 0x11f   : > { %v602_v26 = vsel %vm594_vm3, %v585_v18, %v601_v56  ;;  %v606_v31 = vsel %vm594_vm3, %v588_v45, %v605_v0  ;;  %vm548_vm12 = vweird.f32 %v2358_v4  ;;  %v753_v30 = vsel %vm2729_vm2, 0, %v751_v60 }
 0x120   : > { %vm2007_vm10 = vcmp.lt.s32.totalorder %v2006_v53, 0  ;;  %v603_v58 = vsel %vm593_vm11, %v600_v20, %v602_v26  ;;  %v607_v59 = vsel %vm593_vm11, %v604_v57, %v606_v31  ;;  %v599_v9 = vsel %vm593_vm11, %v596_v54, %v598_v44 }
 0x121   : > { %v735_v36 = vsel %vm2007_vm10, 0, %v2006_v53  ;;  %v876_v15 = vshrl.u32 %v875_v51, 23  ;;  %v2761_v50 = vmul.u32.u64.low %v2744_v61, %v607_v59  ;;  %v2762_v55 = vmul.u32.u64.high %v2744_v61, %v607_v59, %v2761_v50 }
 0x122   : > { %v736_v1 = vsub.s32 32, %v735_v36  ;;  %v740_v2 = vsub.s32 4294967266, %v735_v36  ;;  %v2765_v46 = vmul.u32.u64.low %v2744_v61, %v603_v58  ;;  %v2766_v12 = vmul.u32.u64.high %v2744_v61, %v603_v58, %v2765_v46 }
 0x123   : > { %v2154_v24 = vpop.eup %2153  ;;  %v737_v27 = vshll.u32 %v2717_v13, %v735_v36  ;;  %v2012_v8 = vadd.s32 4294967169, %v876_v15  ;;  %vm1392_vm13 = vcmp.eq.s32.totalorder %v2708_v6, 2  ;;  %v757_v47 = vadd.s32 3, %v753_v30 }
 0x124   : > { %v738_v42 = vshrl.u32 %v720_v41, %v736_v1  ;;  %v741_v52 = vadd.s32 127, %v740_v2  ;;  %v2156_v11 = vpop.eup %2155  ;;  %v556_v19 = vxor.u32 2147483648, %v2154_v24  ;;  %v872_v21 = vand.u32 2147483647, %v2712_v10 }
 0x125   : > { %v553_v62 = vxor.u32 2147483648, %v2156_v11  ;;  %v882_v63 = vadd.s32 1, %v2012_v8  ;;  %v615_v13 = vmul.u32 %v2744_v61, %v599_v9  ;;  %vm617_vm14 = vc.u32 %v2762_v55, %v2765_v46 }
 0x126   : > { %v739_v39 = vor.u32 %v738_v42, %v737_v27  ;;  %v742_v5 = vshll.u32 %v741_v52, 23  ;;  %v557_v32 = vsel %vm555_vm5, %v556_v19, %v2156_v11  ;;  %v1394_v37 = vsel %vm1392_vm13, %v556_v19, %v2156_v11 }
 0x127   : > { %v554_v18 = vsel %vm552_vm6, %v2154_v24, %v553_v62  ;;  %v1391_v41 = vsel %vm1389_vm7, %v2154_v24, %v553_v62  ;;  %v618_v61 = vadd.s32 1, %v2766_v12  ;;  %vm883_vm15 = vcmp.gt.s32.totalorder %v882_v63, 0 }
 0x128   : > { %v743_v45 = vor.u32 4788187, %v742_v5  ;;  %v746_v25 = vcvt.s32.f32 %v739_v39  ;;  %v558_v3 = vsel %vm551_vm8, %v554_v18, %v557_v32  ;;  %v1395_v16 = vsel %vm1388_vm9, %v1391_v41, %v1394_v37 }
 0x129   : > { %v559_v51 = vsel %vm548_vm12, nan, %v558_v3  ;;  %v1396_v60 = vsel %vm548_vm12, nan, %v1395_v16  ;;  %v884_v54 = vsel %vm883_vm15, %v882_v63, 0  ;;  %v619_v6 = vsel %vm617_vm14, %v618_v61, %v2766_v12 }
 0x12a   : > { %v744_v53 = vand.u32 2147483647, %v743_v45  ;;  %1082 = vst [vmem:[%s2646_s13 + $0x10] sm:$0xff] %v559_v51  ;;  %1914 = vst [vmem:[%s2646_s13 + $0x50] sm:$0xff] %v1396_v60  ;;  %v886_v14 = vand.u32 31, %v884_v54  ;;  %v620_v44 = vadd.s32 %v619_v6, %v615_v13  ;;  %v2799_v4 = vadd.f32 %v230_v7, %v2344_v43 }
 0x12b   : > { %v879_v56 = vand.u32 8388607, %v872_v21  ;;  %v2801_v26 = vand.u32 3, %v757_v47  ;;  %v2803_v31 = vand.u32 3, %v753_v30  ;;  %v2805_v58 = vshrl.u32 %v884_v54, 5 }
 0x12c   : > { %v747_v20 = vmul.f32 %v746_v25, %v744_v53  ;;  %v887_v57 = vsub.s32 32, %v886_v14  ;;  %v621_v36 = vadd.s32 536870912, %v620_v44  ;;  %v889_v12 = vshll.u32 %v2244_v29, %v886_v14 }
 0x12d   : > { %v898_v24 = vshll.u32 %v2247_v38, %v886_v14  ;;  %v901_v27 = vshll.u32 %v2248_v40, %v886_v14  ;;  %v892_v52 = vshll.u32 %v2245_v33, %v886_v14  ;;  %v895_v8 = vshll.u32 %v2246_v35, %v886_v14 }
 0x12e   : > { %v748_v0 = vxor.u32 2147483648, %v747_v20  ;;  %v890_v59 = vshrl.u32 %v2245_v33, %v887_v57  ;;  %v893_v1 = vshrl.u32 %v2246_v35, %v887_v57  ;;  %v896_v2 = vshrl.u32 %v2247_v38, %v887_v57 }
 0x12f   : > { %v2812_v15 = vshrl.u32 %v621_v36, 30  ;;  %v899_v43 = vshrl.u32 %v2248_v40, %v887_v57  ;;  %v902_v50 = vshrl.u32 %v2249_v48, %v887_v57  ;;  %v771_v47 = vand.u32 2139095040, %v2799_v4 }
 0x130   : > { %v749_v9 = vsel %vm666_vm1, %v748_v0, %v747_v20  ;;  %v891_v62 = vor.u32 %v890_v59, %v889_v12  ;;  %v894_v39 = vor.u32 %v893_v1, %v892_v52  ;;  %v897_v5 = vor.u32 %v896_v2, %v895_v8 }
 0x131   : > { %v752_v30 = vsel %vm2729_vm2, %v2365_v22, %v749_v9  ;;  %v623_v42 = vshll.u32 %v2812_v15, 30  ;;  %v900_v11 = vor.u32 %v899_v43, %v898_v24  ;;  %v903_v19 = vor.u32 %v902_v50, %v901_v27 }
 0x132   : > { %2157 = vcosq.f32 %v752_v30  ;;  %vm1598_vm1 = vcmp.eq.s32.totalorder %v2803_v31, 2  ;;  %v880_v32 = vor.u32 8388608, %v879_v56  ;;  %vm907_vm2 = vcmp.lt.s32.totalorder %v2805_v58, 4 }
 0x133   : > { %2159 = vsinq.f32 %v752_v30  ;;  %v2826_v17 = vsub.s32 %v620_v44, %v623_v42  ;;  %vm1595_vm0 = vcmp.eq.s32.totalorder %v2803_v31, 0  ;;  %vm904_vm3 = vcmp.lt.s32.totalorder %v2805_v58, 1 }
 0x134   : > { %v913_v37 = vsel %vm907_vm2, %v900_v11, 920167782  ;;  %v917_v13 = vsel %vm907_vm2, %v903_v19, 1326507024  ;;  %v772_v18 = vshrl.u32 %v771_v47, 23  ;;  %vm759_vm4 = vcmp.lt.s32.totalorder %v2801_v26, 2 }
 0x135   : > { %v626_v63 = vsub.s32 0, %v2826_v17  ;;  %vm1594_vm5 = vcmp.lt.s32.totalorder %v2803_v31, 2  ;;  %vm906_vm6 = vcmp.lt.s32.totalorder %v2805_v58, 3  ;;  %v912_v45 = vsel %vm904_vm3, %v891_v62, %v894_v39 }
 0x136   : > { %v916_v25 = vsel %vm904_vm3, %v894_v39, %v897_v5  ;;  %vm756_vm7 = vweird.f32 %v2365_v22  ;;  %vm760_vm8 = vcmp.eq.s32.totalorder %v2801_v26, 0  ;;  %vm763_vm9 = vcmp.eq.s32.totalorder %v2801_v26, 2 }
 0x137   : > { %v2001_v41 = vmin.u32 %v626_v63, %v2826_v17  ;;  %v914_v3 = vsel %vm906_vm6, %v897_v5, %v913_v37  ;;  %v918_v16 = vsel %vm906_vm6, %v900_v11, %v917_v13  ;;  %v888_v51 = vshrl.u32 %v2244_v29, %v887_v57 }
 0x138   : > { %vm905_vm10 = vcmp.lt.s32.totalorder %v2805_v58, 2  ;;  %v920_v60 = vshll.u32 %v880_v32, 8  ;;  %v909_v53 = vsel %vm907_vm2, %v897_v5, 2102212464  ;;  %v2008_v6 = vadd.s32 4294967169, %v772_v18 }
 0x139   : > { %v628_v61 = vclz %v2001_v41  ;;  %v915_v54 = vsel %vm905_vm10, %v912_v45, %v914_v3  ;;  %v919_v7 = vsel %vm905_vm10, %v916_v25, %v918_v16  ;;  %v616_v20 = vadd.s32 %v2765_v46, %v2762_v55 }
 0x13a   : > { %v2862_v56 = vmul.u32.u64.low %v920_v60, %v919_v7  ;;  %v2863_v57 = vmul.u32.u64.high %v920_v60, %v919_v7, %v2862_v56  ;;  %v908_v59 = vsel %vm904_vm3, %v888_v51, %v891_v62  ;;  %v910_v43 = vsel %vm906_vm6, %v894_v39, %v909_v53 }
 0x13b   : > { %v2002_v44 = vadd.s32 4294967294, %v628_v61  ;;  %v2867_v1 = vmul.u32.u64.low %v920_v60, %v915_v54  ;;  %v2868_v2 = vmul.u32.u64.high %v920_v60, %v915_v54, %v2867_v1  ;;  %v2875_v55 = vadd.f32 %v2346_v49, %v2340_v28 }
 0x13c   : > { %v2158_v14 = vpop.eup %2157  ;;  %v778_v12 = vadd.s32 1, %v2008_v6  ;;  %v646_v28 = vsub.s32 4, %v2812_v15  ;;  %v911_v11 = vsel %vm905_vm10, %v908_v59, %v910_v43  ;;  %vm562_vm14 = vcmp.lt.s32.totalorder %v2546_v34, 0 }
 0x13d   : > { %v2160_v0 = vpop.eup %2159  ;;  %v764_v36 = vxor.u32 2147483648, %v2158_v14  ;;  %vm2003_vm11 = vcmp.lt.s32.totalorder %v2002_v44, 0  ;;  %vm929_vm12 = vc.u32 %v2863_v57, %v2867_v1  ;;  %v930_v39 = vadd.s32 1, %v2868_v2 }
 0x13e   : > { %v761_v9 = vxor.u32 2147483648, %v2160_v0  ;;  %v631_v30 = vsel %vm2003_vm11, 0, %v2002_v44  ;;  %vm779_vm13 = vcmp.gt.s32.totalorder %v778_v12, 0  ;;  %v927_v58 = vmul.u32 %v920_v60, %v911_v11 }
 0x13f   : > { %v765_v46 = vsel %vm763_vm9, %v764_v36, %v2160_v0  ;;  %v1600_v50 = vsel %vm1598_vm1, %v764_v36, %v2160_v0  ;;  %v632_v42 = vsub.s32 32, %v631_v30  ;;  %v636_v8 = vsub.s32 4294967266, %v631_v30 }
 0x140   : > { %v762_v24 = vsel %vm760_vm8, %v2158_v14, %v761_v9  ;;  %v1597_v27 = vsel %vm1595_vm0, %v2158_v14, %v761_v9  ;;  %v633_v26 = vshll.u32 %v2826_v17, %v631_v30  ;;  %v780_v5 = vsel %vm779_vm13, %v778_v12, 0 }
 0x141   : > { %v766_v49 = vsel %vm759_vm4, %v762_v24, %v765_v46  ;;  %v1601_v52 = vsel %vm1594_vm5, %v1597_v27, %v1600_v50  ;;  %v634_v62 = vshrl.u32 %v616_v20, %v632_v42  ;;  %v637_v31 = vadd.s32 127, %v636_v8  ;;  %v238_v8 = vpop.permute.xlu1 %237 }
 0x142   : > { %v767_v19 = vsel %vm756_vm7, nan, %v766_v49  ;;  %v1602_v47 = vsel %vm756_vm7, nan, %v1601_v52  ;;  %v931_v22 = vsel %vm929_vm12, %v930_v39, %v2868_v2  ;;  %v782_v37 = vand.u32 31, %v780_v5 }
 0x143   : > { %1084 = vst [vmem:[%s2646_s13 + $0x20] sm:$0xff] %v767_v19  ;;  %1916 = vst [vmem:[%s2646_s13 + $0x60] sm:$0xff] %v1602_v47  ;;  %v635_v63 = vor.u32 %v634_v62, %v633_v26  ;;  %v638_v32 = vshll.u32 %v637_v31, 23  ;;  %v647_v13 = vsel %vm562_vm14, %v646_v28, %v2812_v15  ;;  %v932_v18 = vadd.s32 %v931_v22, %v927_v58 }
 0x144   : > { %v768_v17 = vand.u32 2147483647, %v2799_v4  ;;  %v783_v45 = vsub.s32 32, %v782_v37  ;;  %vm2910_vm15 = vcmp.le.f32.partialorder %v560_v23, 0.7853982  ;;  %v794_v14 = vshll.u32 %v2247_v38, %v782_v37 }
 0x145   : > { %v639_v41 = vor.u32 4788187, %v638_v32  ;;  %v933_v3 = vadd.s32 536870912, %v932_v18  ;;  %v642_v61 = vcvt.s32.f32 %v635_v63  ;;  %v649_v51 = vsel %vm2910_vm15, 0, %v647_v13 }
 0x146   : > { %v786_v15 = vshrl.u32 %v2245_v33, %v783_v45  ;;  %v789_v53 = vshrl.u32 %v2246_v35, %v783_v45  ;;  %v795_v54 = vshrl.u32 %v2248_v40, %v783_v45  ;;  %v775_v23 = vand.u32 8388607, %v768_v17 }
 0x147   : > { %v640_v16 = vand.u32 2147483647, %v639_v41  ;;  %v2916_v60 = vshrl.u32 %v933_v3, 30  ;;  %v792_v6 = vshrl.u32 %v2247_v38, %v783_v45  ;;  %v2926_v44 = vshrl.u32 %v780_v5, 5 }
 0x148   : > { %v785_v56 = vshll.u32 %v2244_v29, %v782_v37  ;;  %v788_v0 = vshll.u32 %v2245_v33, %v782_v37  ;;  %v791_v59 = vshll.u32 %v2246_v35, %v782_v37  ;;  %v796_v2 = vor.u32 %v795_v54, %v794_v14 }
 0x149   : > { %v643_v7 = vmul.f32 %v642_v61, %v640_v16  ;;  %v935_v20 = vshll.u32 %v2916_v60, 30  ;;  %v798_v9 = vshrl.u32 %v2249_v48, %v783_v45  ;;  %v653_v43 = vadd.s32 3, %v649_v51 }
 0x14a   : > { %v787_v50 = vor.u32 %v786_v15, %v785_v56  ;;  %v790_v30 = vor.u32 %v789_v53, %v788_v0  ;;  %v776_v24 = vor.u32 8388608, %v775_v23  ;;  %v793_v27 = vor.u32 %v792_v6, %v791_v59 }
 0x14b   : > { %v644_v36 = vxor.u32 2147483648, %v643_v7  ;;  %v2932_v46 = vsub.s32 %v932_v18, %v935_v20  ;;  %v797_v42 = vshll.u32 %v2248_v40, %v782_v37  ;;  %v2940_v49 = vand.u32 3, %v649_v51 }
 0x14c   : > { %vm803_vm1 = vcmp.lt.s32.totalorder %v2926_v44, 4  ;;  %vm800_vm2 = vcmp.lt.s32.totalorder %v2926_v44, 1  ;;  %vm802_vm0 = vcmp.lt.s32.totalorder %v2926_v44, 3  ;;  %v654_v26 = vand.u32 3, %v653_v43 }
 0x14d   : > { %v645_v12 = vsel %vm562_vm14, %v644_v36, %v643_v7  ;;  %v938_v52 = vsub.s32 0, %v2932_v46  ;;  %v799_v11 = vor.u32 %v798_v9, %v797_v42  ;;  %v809_v19 = vsel %vm803_vm1, %v796_v2, 920167782 }
 0x14e   : > { %v648_v28 = vsel %vm2910_vm15, %v2546_v34, %v645_v12  ;;  %v808_v62 = vsel %vm800_vm2, %v787_v50, %v790_v30  ;;  %v810_v31 = vsel %vm802_vm0, %v793_v27, %v809_v19  ;;  %v2953_v39 = vshll.u32 %v776_v24, 8 }
 0x14f   : > { %2161 = vcosq.f32 %v648_v28  ;;  %v2013_v47 = vmin.u32 %v938_v52, %v2932_v46  ;;  %v2956_v58 = vadd.f32 %v238_v8, %v2875_v55  ;;  %vm801_vm3 = vcmp.lt.s32.totalorder %v2926_v44, 2 }
 0x150   : > { %2163 = vsinq.f32 %v648_v28  ;;  %v805_v63 = vsel %vm803_vm1, %v793_v27, 2102212464  ;;  %v812_v32 = vsel %vm800_vm2, %v790_v30, %v793_v27  ;;  %vm1495_vm4 = vcmp.eq.s32.totalorder %v2940_v49, 2 }
 0x151   : > { %v940_v5 = vclz %v2013_v47  ;;  %v784_v22 = vshrl.u32 %v2244_v29, %v783_v45  ;;  %v811_v37 = vsel %vm801_vm3, %v808_v62, %v810_v31  ;;  %v813_v55 = vsel %vm803_vm1, %v799_v11, 1326507024 }
 0x152   : > { %vm1492_vm5 = vcmp.eq.s32.totalorder %v2940_v49, 0  ;;  %v814_v18 = vsel %vm802_vm0, %v796_v2, %v813_v55  ;;  %v2973_v41 = vmul.u32.u64.low %v2953_v39, %v811_v37  ;;  %v2974_v25 = vmul.u32.u64.high %v2953_v39, %v811_v37, %v2973_v41 }
 0x153   : > { %v2014_v13 = vadd.s32 4294967294, %v940_v5  ;;  %vm1491_vm6 = vcmp.lt.s32.totalorder %v2940_v49, 2  ;;  %vm874_vm7 = vcmp.lt.s32.totalorder %v2712_v10, 0  ;;  %v804_v45 = vsel %vm800_vm2, %v784_v22, %v787_v50 }
 0x154   : > { %v806_v3 = vsel %vm802_vm0, %v790_v30, %v805_v63  ;;  %v815_v16 = vsel %vm801_vm3, %v812_v32, %v814_v18  ;;  %v979_v61 = vand.u32 2139095040, %v2956_v58  ;;  %vm652_vm8 = vweird.f32 %v2546_v34 }
 0x155   : > { %vm655_vm9 = vcmp.lt.s32.totalorder %v654_v26, 2  ;;  %vm2015_vm10 = vcmp.lt.s32.totalorder %v2014_v13, 0  ;;  %v2988_v51 = vmul.u32.u64.low %v2953_v39, %v815_v16  ;;  %v2989_v15 = vmul.u32.u64.high %v2953_v39, %v815_v16, %v2988_v51 }
 0x156   : > { %vm656_vm11 = vcmp.eq.s32.totalorder %v654_v26, 0  ;;  %vm659_vm12 = vcmp.eq.s32.totalorder %v654_v26, 2  ;;  %v943_v53 = vsel %vm2015_vm10, 0, %v2014_v13  ;;  %v980_v54 = vshrl.u32 %v979_v61, 23 }
 0x157   : > { %vm2993_vm13 = vcmp.le.f32.partialorder %v872_v21, 0.7853982  ;;  %v928_v23 = vadd.s32 %v2867_v1, %v2863_v57  ;;  %v944_v6 = vsub.s32 32, %v943_v53  ;;  %v948_v14 = vsub.s32 4294967266, %v943_v53 }
 0x158   : > { %v807_v20 = vsel %vm801_vm3, %v804_v45, %v806_v3  ;;  %v958_v0 = vsub.s32 4, %v2916_v60  ;;  %v826_v36 = vadd.s32 1, %v2974_v25  ;;  %v976_v59 = vand.u32 2147483647, %v2956_v58 }
 0x159   : > { %v2162_v56 = vpop.eup %2161  ;;  %v2016_v2 = vadd.s32 4294967169, %v980_v54  ;;  %v945_v43 = vshll.u32 %v2932_v46, %v943_v53  ;;  %v946_v50 = vshrl.u32 %v928_v23, %v944_v6  ;;  %v949_v30 = vadd.s32 127, %v948_v14 }
 0x15a   : > { %v2164_v21 = vpop.eup %2163  ;;  %v660_v9 = vxor.u32 2147483648, %v2162_v56  ;;  %v823_v1 = vmul.u32 %v2953_v39, %v807_v20  ;;  %vm825_vm14 = vc.u32 %v2989_v15, %v2973_v41  ;;  %v959_v47 = vsel %vm874_vm7, %v958_v0, %v2916_v60 }
 0x15b   : > { %v657_v57 = vxor.u32 2147483648, %v2164_v21  ;;  %v986_v44 = vadd.s32 1, %v2016_v2  ;;  %v947_v27 = vor.u32 %v946_v50, %v945_v43  ;;  %v950_v42 = vshll.u32 %v949_v30, 23 }
 0x15c   : > { %v661_v12 = vsel %vm659_vm12, %v660_v9, %v2164_v21  ;;  %v1497_v24 = vsel %vm1495_vm4, %v660_v9, %v2164_v21  ;;  %v827_v52 = vsel %vm825_vm14, %v826_v36, %v2974_v25  ;;  %v983_v49 = vand.u32 8388607, %v976_v59 }
 0x15d   : > { %v658_v46 = vsel %vm656_vm11, %v2162_v56, %v657_v57  ;;  %v1494_v28 = vsel %vm1492_vm5, %v2162_v56, %v657_v57  ;;  %vm987_vm15 = vcmp.gt.s32.totalorder %v986_v44, 0  ;;  %v951_v19 = vor.u32 4788187, %v950_v42 }
 0x15e   : > { %v662_v8 = vsel %vm655_vm9, %v658_v46, %v661_v12  ;;  %v1498_v11 = vsel %vm1491_vm6, %v1494_v28, %v1497_v24  ;;  %v828_v39 = vadd.s32 %v827_v52, %v823_v1  ;;  %v988_v5 = vsel %vm987_vm15, %v986_v44, 0 }
 0x15f   : > { %v663_v62 = vsel %vm652_vm8, nan, %v662_v8  ;;  %v1499_v31 = vsel %vm652_vm8, nan, %v1498_v11  ;;  %v952_v26 = vand.u32 2147483647, %v951_v19  ;;  %v954_v63 = vcvt.s32.f32 %v947_v27 }
 0x160   : > { %1083 = vst [vmem:[%s2646_s13 + $0x18] sm:$0xff] %v663_v62  ;;  %1915 = vst [vmem:[%s2646_s13 + $0x58] sm:$0xff] %v1499_v31  ;;  %v990_v32 = vand.u32 31, %v988_v5  ;;  %v961_v22 = vsel %vm2993_vm13, 0, %v959_v47  ;;  %v829_v60 = vadd.s32 536870912, %v828_v39  ;;  %v984_v45 = vor.u32 8388608, %v983_v49 }
 0x161   : > { %v955_v37 = vmul.f32 %v954_v63, %v952_v26  ;;  %v965_v18 = vadd.s32 3, %v961_v22  ;;  %v3033_v25 = vand.u32 3, %v961_v22  ;;  %v3036_v16 = vshrl.u32 %v988_v5, 5 }
 0x162   : > { %v991_v55 = vsub.s32 32, %v990_v32  ;;  %v3031_v13 = vshrl.u32 %v829_v60, 30  ;;  %v993_v56 = vshll.u32 %v2244_v29, %v990_v32  ;;  %v996_v0 = vshll.u32 %v2245_v33, %v990_v32 }
 0x163   : > { %v956_v34 = vxor.u32 2147483648, %v955_v37  ;;  %v999_v36 = vshll.u32 %v2246_v35, %v990_v32  ;;  %v1002_v2 = vshll.u32 %v2247_v38, %v990_v32  ;;  %v1005_v21 = vshll.u32 %v2248_v40, %v990_v32 }
 0x164   : > { %v831_v3 = vshll.u32 %v3031_v13, 30  ;;  %v994_v61 = vshrl.u32 %v2245_v33, %v991_v55  ;;  %v997_v51 = vshrl.u32 %v2246_v35, %v991_v55  ;;  %v1000_v54 = vshrl.u32 %v2247_v38, %v991_v55 }
 0x165   : > { %v957_v53 = vsel %vm874_vm7, %v956_v34, %v955_v37  ;;  %v1003_v23 = vshrl.u32 %v2248_v40, %v991_v55  ;;  %v1006_v6 = vshrl.u32 %v2249_v48, %v991_v55  ;;  %v966_v7 = vand.u32 3, %v965_v18 }
 0x166   : > { %v960_v14 = vsel %vm2993_vm13, %v2712_v10, %v957_v53  ;;  %v3048_v20 = vsub.s32 %v828_v39, %v831_v3  ;;  %v995_v9 = vor.u32 %v994_v61, %v993_v56  ;;  %v998_v43 = vor.u32 %v997_v51, %v996_v0 }
 0x167   : > { %2165 = vcosq.f32 %v960_v14  ;;  %v1001_v50 = vor.u32 %v1000_v54, %v999_v36  ;;  %v1004_v30 = vor.u32 %v1003_v23, %v1002_v2  ;;  %v1007_v57 = vor.u32 %v1006_v6, %v1005_v21 }
 0x168   : > { %2167 = vsinq.f32 %v960_v14  ;;  %v834_v48 = vsub.s32 0, %v3048_v20  ;;  %vm1804_vm1 = vcmp.eq.s32.totalorder %v3033_v25, 2  ;;  %vm1008_vm2 = vcmp.lt.s32.totalorder %v3036_v16, 1 }
 0x169   : > { %vm1801_vm0 = vcmp.eq.s32.totalorder %v3033_v25, 0  ;;  %vm1011_vm3 = vcmp.lt.s32.totalorder %v3036_v16, 4  ;;  %v1016_v35 = vsel %vm1008_vm2, %v995_v9, %v998_v43  ;;  %v1024_v38 = vshll.u32 %v984_v45, 8 }
 0x16a   : > { %v2009_v1 = vmin.u32 %v834_v48, %v3048_v20  ;;  %vm967_vm4 = vcmp.lt.s32.totalorder %v966_v7, 2  ;;  %vm1800_vm5 = vcmp.lt.s32.totalorder %v3033_v25, 2  ;;  %vm1010_vm6 = vcmp.lt.s32.totalorder %v3036_v16, 3 }
 0x16b   : > { %v1017_v40 = vsel %vm1011_vm3, %v1004_v30, 920167782  ;;  %v1020_v44 = vsel %vm1008_vm2, %v998_v43, %v1001_v50  ;;  %v1021_v12 = vsel %vm1011_vm3, %v1007_v57, 1326507024  ;;  %vm964_vm7 = vweird.f32 %v2712_v10 }
 0x16c   : > { %v836_v33 = vclz %v2009_v1  ;;  %vm1009_vm8 = vcmp.lt.s32.totalorder %v3036_v16, 2  ;;  %v1018_v27 = vsel %vm1010_vm6, %v1001_v50, %v1017_v40  ;;  %v1022_v42 = vsel %vm1010_vm6, %v1004_v30, %v1021_v12 }
 0x16d   : > { %v992_v46 = vshrl.u32 %v2244_v29, %v991_v55  ;;  %v1013_v28 = vsel %vm1011_vm3, %v1001_v50, 2102212464  ;;  %v1019_v52 = vsel %vm1009_vm8, %v1016_v35, %v1018_v27  ;;  %v1023_v8 = vsel %vm1009_vm8, %v1020_v44, %v1022_v42 }
 0x16e   : > { %v2010_v24 = vadd.s32 4294967294, %v836_v33  ;;  %v824_v11 = vadd.s32 %v2973_v41, %v2989_v15  ;;  %v3080_v19 = vmul.u32.u64.low %v1024_v38, %v1023_v8  ;;  %v3081_v47 = vmul.u32.u64.high %v1024_v38, %v1023_v8, %v3080_v19 }
 0x16f   : > { %v1012_v39 = vsel %vm1008_vm2, %v992_v46, %v995_v9  ;;  %v3085_v29 = vmul.u32.u64.low %v1024_v38, %v1019_v52  ;;  %v3086_v5 = vmul.u32.u64.high %v1024_v38, %v1019_v52, %v3085_v29  ;;  %v1014_v41 = vsel %vm1010_vm6, %v998_v43, %v1013_v28 }
 0x170   : > { %vm2011_vm9 = vcmp.lt.s32.totalorder %v2010_v24, 0  ;;  %vm968_vm10 = vcmp.eq.s32.totalorder %v966_v7, 0  ;;  %vm971_vm11 = vcmp.eq.s32.totalorder %v966_v7, 2  ;;  %v1015_v3 = vsel %vm1009_vm8, %v1012_v39, %v1014_v41 }
 0x171   : > { %v2166_v62 = vpop.eup %2165  ;;  %v839_v31 = vsel %vm2011_vm9, 0, %v2010_v24  ;;  %vm1033_vm12 = vc.u32 %v3081_v47, %v3085_v29  ;;  %v1034_v14 = vadd.s32 1, %v3086_v5  ;;  %v854_v2 = vsub.s32 4, %v3031_v13 }
 0x172   : > { %v2168_v26 = vpop.eup %2167  ;;  %v972_v63 = vxor.u32 2147483648, %v2166_v62  ;;  %v840_v49 = vsub.s32 32, %v839_v31  ;;  %v844_v32 = vsub.s32 4294967266, %v839_v31  ;;  %v841_v22 = vshll.u32 %v3048_v20, %v839_v31 }
 0x173   : > { %v969_v15 = vxor.u32 2147483648, %v2168_v26  ;;  %v1031_v20 = vmul.u32 %v1024_v38, %v1015_v3  ;;  %v1035_v56 = vsel %vm1033_vm12, %v1034_v14, %v3086_v5  ;;  %vm770_vm13 = vcmp.lt.s32.totalorder %v2799_v4, 0 }
 0x174   : > { %v973_v60 = vsel %vm971_vm11, %v972_v63, %v2168_v26  ;;  %v1806_v37 = vsel %vm1804_vm1, %v972_v63, %v2168_v26  ;;  %v842_v55 = vshrl.u32 %v824_v11, %v840_v49  ;;  %v845_v34 = vadd.s32 127, %v844_v32 }
 0x175   : > { %v970_v18 = vsel %vm968_vm10, %v2166_v62, %v969_v15  ;;  %v1803_v45 = vsel %vm1801_vm0, %v2166_v62, %v969_v15  ;;  %v1036_v25 = vadd.s32 %v1035_v56, %v1031_v20  ;;  %v855_v43 = vsel %vm770_vm13, %v854_v2, %v3031_v13 }
 0x176   : > { %v974_v61 = vsel %vm967_vm4, %v970_v18, %v973_v60  ;;  %v1807_v51 = vsel %vm1800_vm5, %v1803_v45, %v1806_v37  ;;  %v843_v53 = vor.u32 %v842_v55, %v841_v22  ;;  %v846_v54 = vshll.u32 %v845_v34, 23 }
 0x177   : > { %v975_v23 = vsel %vm964_vm7, nan, %v974_v61  ;;  %v1808_v6 = vsel %vm964_vm7, nan, %v1807_v51  ;;  %v1037_v48 = vadd.s32 536870912, %v1036_v25  ;;  %vm769_vm14 = vcmp.le.f32.partialorder %v768_v17, 0.7853982 }
 0x178   : > { %1086 = vst [vmem:[%s2646_s13 + $0x30] sm:$0xff] %v975_v23  ;;  %1918 = vst [vmem:[%s2646_s13 + $0x70] sm:$0xff] %v1808_v6  ;;  %v847_v16 = vor.u32 4788187, %v846_v54  ;;  %v850_v36 = vcvt.s32.f32 %v843_v53  ;;  %v857_v57 = vsel %vm769_vm14, 0, %v855_v43  ;;  %v1032_v28 = vadd.s32 %v3085_v29, %v3081_v47 }
 0x179   : > { %v1038_v10 = vshrl.u32 %v1037_v48, 30  ;;  %v861_v35 = vadd.s32 3, %v857_v57  ;;  %v1696_v40 = vand.u32 3, %v857_v57  ;;  %vm860_vm6 = vweird.f32 %v2799_v4 }
 0x17a   : > { %v848_v0 = vand.u32 2147483647, %v847_v16  ;;  %vm978_vm7 = vcmp.lt.s32.totalorder %v2956_v58, 0  ;;  %vm977_vm8 = vcmp.le.f32.partialorder %v976_v59, 0.7853982 }
 0x17b   : > { %v1039_v50 = vshll.u32 %v1038_v10, 30  ;;  %v862_v12 = vand.u32 3, %v861_v35  ;;  %vm1697_vm15 = vcmp.lt.s32.totalorder %v1696_v40, 2  ;;  %vm1698_vm1 = vcmp.eq.s32.totalorder %v1696_v40, 0 }
 0x17c   : > { %v851_v21 = vmul.f32 %v850_v36, %v848_v0  ;;  %vm1701_vm2 = vcmp.eq.s32.totalorder %v1696_v40, 2  ;;  %v1062_v55 = vsub.s32 4, %v1038_v10 }
 0x17d   : > { %v1040_v1 = vsub.s32 %v1036_v25, %v1039_v50  ;;  %vm863_vm3 = vcmp.lt.s32.totalorder %v862_v12, 2  ;;  %vm867_vm4 = vcmp.eq.s32.totalorder %v862_v12, 2  ;;  %vm864_vm5 = vcmp.eq.s32.totalorder %v862_v12, 0 }
 0x17e   : > { %v852_v9 = vxor.u32 2147483648, %v851_v21  ;;  %v1063_v18 = vsel %vm978_vm7, %v1062_v55, %v1038_v10 }
 0x17f   : > { %v1042_v33 = vsub.s32 0, %v1040_v1  ;;  %v1065_v3 = vsel %vm977_vm8, 0, %v1063_v18 }
 0x180   : > { %v853_v7 = vsel %vm770_vm13, %v852_v9, %v851_v21  ;;  %v1069_v61 = vadd.s32 3, %v1065_v3  ;;  %v1902_v53 = vand.u32 3, %v1065_v3 }
 0x181   : > { %v856_v30 = vsel %vm769_vm14, %v2799_v4, %v853_v7  ;;  %v2017_v38 = vmin.u32 %v1042_v33, %v1040_v1 }
 0x182   : > { %2169 = vcosq.f32 %v856_v30  ;;  %v1070_v51 = vand.u32 3, %v1069_v61  ;;  %vm1907_vm10 = vcmp.eq.s32.totalorder %v1902_v53, 2  ;;  %vm1904_vm12 = vcmp.eq.s32.totalorder %v1902_v53, 0 }
 0x183   : > { %2171 = vsinq.f32 %v856_v30  ;;  %v1044_v44 = vclz %v2017_v38  ;;  %vm1903_vm14 = vcmp.lt.s32.totalorder %v1902_v53, 2 }
 0x184   : > { %vm1075_vm9 = vcmp.eq.s32.totalorder %v1070_v51, 2  ;;  %vm1072_vm11 = vcmp.eq.s32.totalorder %v1070_v51, 0  ;;  %vm1071_vm13 = vcmp.lt.s32.totalorder %v1070_v51, 2 }
 0x185   : > { %v2018_v24 = vadd.s32 4294967294, %v1044_v44 }
 0x187   : > { %vm2019_vm0 = vcmp.lt.s32.totalorder %v2018_v24, 0 }
 0x188   : > { %v1047_v42 = vsel %vm2019_vm0, 0, %v2018_v24 }
 0x189   : > { %v1048_v52 = vsub.s32 32, %v1047_v42  ;;  %v1052_v8 = vsub.s32 4294967266, %v1047_v42  ;;  %v1049_v62 = vshll.u32 %v1040_v1, %v1047_v42 }
 0x18b   : > { %v1050_v5 = vshrl.u32 %v1032_v28, %v1048_v52  ;;  %v1053_v26 = vadd.s32 127, %v1052_v8 }
 0x18c   : > { %v2170_v27 = vpop.eup %2169 }
 0x18d   : > { %v2172_v17 = vpop.eup %2171  ;;  %v868_v13 = vxor.u32 2147483648, %v2170_v27  ;;  %v1051_v32 = vor.u32 %v1050_v5, %v1049_v62  ;;  %v1054_v41 = vshll.u32 %v1053_v26, 23 }
 0x18e   : > { %v865_v46 = vxor.u32 2147483648, %v2172_v17 }
 0x18f   : > { %v869_v11 = vsel %vm867_vm4, %v868_v13, %v2172_v17  ;;  %v1703_v19 = vsel %vm1701_vm2, %v868_v13, %v2172_v17  ;;  %v1055_v15 = vor.u32 4788187, %v1054_v41  ;;  %v1058_v60 = vcvt.s32.f32 %v1051_v32 }
 0x190   : > { %v866_v31 = vsel %vm864_vm5, %v2170_v27, %v865_v46  ;;  %v1700_v39 = vsel %vm1698_vm1, %v2170_v27, %v865_v46 }
 0x191   : > { %v870_v63 = vsel %vm863_vm3, %v866_v31, %v869_v11  ;;  %v1704_v49 = vsel %vm1697_vm15, %v1700_v39, %v1703_v19  ;;  %v1056_v22 = vand.u32 2147483647, %v1055_v15  ;;  %vm1068_vm15 = vweird.f32 %v2956_v58 }
 0x192   : > { %v871_v47 = vsel %vm860_vm6, nan, %v870_v63  ;;  %v1705_v29 = vsel %vm860_vm6, nan, %v1704_v49 }
 0x193   : > { %1085 = vst [vmem:[%s2646_s13 + $0x28] sm:$0xff] %v871_v47  ;;  %1917 = vst [vmem:[%s2646_s13 + $0x68] sm:$0xff] %v1705_v29  ;;  %v1059_v37 = vmul.f32 %v1058_v60, %v1056_v22 }
 0x195   : > { %v1060_v34 = vxor.u32 2147483648, %v1059_v37 }
 0x197   : > { %v1061_v4 = vsel %vm978_vm7, %v1060_v34, %v1059_v37 }
 0x198   : > { %v1064_v45 = vsel %vm977_vm8, %v2956_v58, %v1061_v4 }
 0x199   : > { %2173 = vcosq.f32 %v1064_v45 }
 0x19a   : > { %2175 = vsinq.f32 %v1064_v45 }
 0x1a3   : > { %v2174_v54 = vpop.eup %2173 }
 0x1a4   : > { %v2176_v23 = vpop.eup %2175  ;;  %v1076_v6 = vxor.u32 2147483648, %v2174_v54 }
 0x1a5   : > { %v1073_v14 = vxor.u32 2147483648, %v2176_v23 }
 0x1a6   : > { %v1077_v59 = vsel %vm1075_vm9, %v1076_v6, %v2176_v23  ;;  %v1909_v16 = vsel %vm1907_vm10, %v1076_v6, %v2176_v23 }
 0x1a7   : > { %v1074_v20 = vsel %vm1072_vm11, %v2174_v54, %v1073_v14  ;;  %v1906_v56 = vsel %vm1904_vm12, %v2174_v54, %v1073_v14 }
 0x1a8   : > { %v1078_v0 = vsel %vm1071_vm13, %v1074_v20, %v1077_v59  ;;  %v1910_v36 = vsel %vm1903_vm14, %v1906_v56, %v1909_v16 }
 0x1a9   : > { %v1079_v25 = vsel %vm1068_vm15, nan, %v1078_v0  ;;  %v1911_v2 = vsel %vm1068_vm15, nan, %v1910_v36 }
 0x1aa   : > { %1087 = vst [vmem:[%s2646_s13 + $0x38] sm:$0xff] %v1079_v25  ;;  %1919 = vst [vmem:[%s2646_s13 + $0x78] sm:$0xff] %v1911_v2 }
 0x1ab   : > { %2190 = shalt.err (!%p2187_p2)
}
 0x1ac   : > { %s2191_s26 = scalar_lea.hbm %s3134_s20, 2048  ;;  %s2195_s29 = scalar_lea.hbm %s3185_s1, 4096 }
 0x1ad   : > { %p2192_p3 = scmp.ne.s32.totalorder %s3134_s20, %s2191_s26  ;;  %p2196_p8 = scmp.lt.u32.totalorder %s3134_s20, %s3185_s1 }
 0x1ae   : > { %p2197_p9 = scmp.lt.u32.totalorder %s2195_s29, %s2191_s26  ;;  %p2199_p11 = scmp.lt.u32.totalorder %s2191_s26, %s3134_s20 }
 0x1af   : > { %p2193_p4 = pnand %p2192_p3, %p2301_p5 }
 0x1b0   : > { %p2198_p10 = por %p2197_p9, %p2196_p8 }
 0x1b1   : > { %p2194_p7 = pneg %p2193_p4 }
 0x1b2   : > { %p2200_p12 = por %p2199_p11, %p2198_p10 }
 0x1b4   : > { %p2201_p13 = pnand %p2200_p12, %p2194_p7 }
 0x1b6   : > { %2204 = shalt.err (!%p2201_p13)
}
 0x1b7   : > { %s2251_s3 = smov 128   ;;  %s2252_s4 = smov 256  }
 0x1b8   : > { %s2253_s5 = smov 8  }
 0x1b9   : > { %2088 = dma.vmem_to_hbm [thread:$0]  (%p2301_p5), %s3136_s14, 2048, %s3134_s20, %s3143_s21, %s2251_s3, %s2252_s4, %s2253_s5  }
 0x1ba PF: > { %p2094_p0 = scmp.ge.s32.totalorder %s2239_s9, 2  ;;  %s1948_s10 = sand.u32 1, %s2227_s6  }
 0x1bb   : > { %s1949_s11 = scalar_lea.sflag [#allocation3], %s1948_s10 }
 0x1bc   : > { %p2091_p1 = pnand %p2094_p0, %p2305_p6 }
 0x1be   : > { %2222 = dma.done.wait (!%p2091_p1), %s1949_s11, 2048  }
 0x1bf   : > { %2224 = vsyncadd (!%p2091_p1), %s1949_s11, 4294965248  ;;  %p11_p2 = scmp.ge.s32.totalorder %s2287_s12, 4   ;;  %s3200_s6 = smov %s2231_s7 }
 0x1c0   : > { %s3201_s7 = smov %s2235_s8  ;;  %s3202_s8 = smov %s2299_s15 }
 0x1c1   : > { %s3203_s9 = smov %s2287_s12  ;;  %13 = sbr.rel (!%p11_p2) target bundleno = 3 (0x3), region = 56 }
 0x1c8   :  { %1954 = vsyncpa [#allocation3], 1 }
 0x1c9   :  { %1956 = vsyncpa [#allocation3 + $0x1], 1 }

</bundles_post_ra>
